<compile_context>
chip_gen: v6e
topology: v6e:2x2x1
jax: 0.10.0
libtpu: 0.0.40
codegen_flags: <defaults>
</compile_context>

<pallas_src>
import math
import functools

import jax
import jax.numpy as jnp
from jax import lax
from jax.experimental import pallas as pl
from jax.experimental.pallas import tpu as pltpu


# ---------------------------------------------------------------------------
# In-kernel helpers (pure functions on VMEM-resident values)
# ---------------------------------------------------------------------------

def _matmul_nt(x, w):
    """x @ w.T without materializing the transpose: x (M,K), w (N,K) -> (M,N)."""
    return lax.dot_general(
        x, w,
        dimension_numbers=(((1,), (1,)), ((), ())),
        preferred_element_type=jnp.float32,
    )


def _layer_norm(y, g, b, eps):
    mu = jnp.mean(y, axis=-1, keepdims=True)
    var = jnp.mean(jnp.square(y - mu), axis=-1, keepdims=True)
    return (y - mu) * lax.rsqrt(var + eps) * g + b


def _mha(q_in, k_in, v_in, in_w, in_b, out_w, out_b, nhead):
    """nn.MultiheadAttention forward (no masks, eval) for one batch element.

    q_in:(Lq,D)  k_in,v_in:(Lk,D)  in_w:(3D,D)  in_b:(1,3D)  out_w:(D,D)  out_b:(1,D)
    """
    D = q_in.shape[-1]
    dh = D // nhead
    scale = 1.0 / math.sqrt(dh)

    if q_in is k_in:
        # shared Q/K input -> single fused projection matmul
        qk = _matmul_nt(q_in, in_w[0:2 * D]) + in_b[:, 0:2 * D]
        q, k = qk[:, 0:D], qk[:, D:2 * D]
    else:
        q = _matmul_nt(q_in, in_w[0:D]) + in_b[:, 0:D]
        k = _matmul_nt(k_in, in_w[D:2 * D]) + in_b[:, D:2 * D]
    v = _matmul_nt(v_in, in_w[2 * D:3 * D]) + in_b[:, 2 * D:3 * D]

    # Per-head attention; fold head-concat + output projection into an
    # accumulation:  concat_h(o_h) @ out_w.T == sum_h o_h @ out_w[:, h*dh:(h+1)*dh].T
    proj = jnp.zeros((q_in.shape[0], D), jnp.float32)
    for h in range(nhead):
        sl = slice(h * dh, (h + 1) * dh)
        qh, kh, vh = q[:, sl], k[:, sl], v[:, sl]
        s = _matmul_nt(qh, kh) * scale                    # (Lq, Lk)
        m = jnp.max(s, axis=-1, keepdims=True)
        p = jnp.exp(s - m)
        p = p / jnp.sum(p, axis=-1, keepdims=True)
        oh = jnp.dot(p, vh, preferred_element_type=jnp.float32)   # (Lq, dh)
        proj = proj + _matmul_nt(oh, out_w[:, sl])                 # (Lq, D)
    return proj + out_b


# ---------------------------------------------------------------------------
# Fused decoder-layer kernel (one grid step == one batch element)
# ---------------------------------------------------------------------------

def _decoder_layer_kernel(
    tgt_ref, mem_ref, qpos_ref, pos_ref,
    sa_in_w_ref, sa_in_b_ref, sa_out_w_ref, sa_out_b_ref,
    ca_in_w_ref, ca_in_b_ref, ca_out_w_ref, ca_out_b_ref,
    ff_w1_ref, ff_b1_ref, ff_w2_ref, ff_b2_ref,
    ln1_g_ref, ln1_b_ref, ln2_g_ref, ln2_b_ref, ln3_g_ref, ln3_b_ref,
    out_ref, *, nhead, eps,
):
    x = tgt_ref[...]       # (T, D)
    mem = mem_ref[...]     # (S, D)
    qpos = qpos_ref[...]   # (T, D)
    pos = pos_ref[...]     # (S, D)

    # --- self attention + add & norm1 ---
    qk = x + qpos
    sa = _mha(qk, qk, x,
              sa_in_w_ref[...], sa_in_b_ref[...],
              sa_out_w_ref[...], sa_out_b_ref[...], nhead)
    x = _layer_norm(x + sa, ln1_g_ref[...], ln1_b_ref[...], eps)

    # --- cross attention + add & norm2 ---
    ca = _mha(x + qpos, mem + pos, mem,
              ca_in_w_ref[...], ca_in_b_ref[...],
              ca_out_w_ref[...], ca_out_b_ref[...], nhead)
    x = _layer_norm(x + ca, ln2_g_ref[...], ln2_b_ref[...], eps)

    # --- feed-forward (relu) + add & norm3 ---
    h = jnp.maximum(_matmul_nt(x, ff_w1_ref[...]) + ff_b1_ref[...], 0.0)
    f = _matmul_nt(h, ff_w2_ref[...]) + ff_b2_ref[...]
    x = _layer_norm(x + f, ln3_g_ref[...], ln3_b_ref[...], eps)

    out_ref[...] = x


# ---------------------------------------------------------------------------
# Wrapper
# ---------------------------------------------------------------------------

def transformer_decoder_layer(tgt, memory, params, nhead,
                              pos=None, query_pos=None, eps=1e-5):
    T, B, D = tgt.shape
    S = memory.shape[0]
    f32 = jnp.float32

    # seq-first (L, B, D) -> batch-first (B, L, D); batch becomes the grid axis.
    tgt_b = jnp.transpose(tgt, (1, 0, 2)).astype(f32)
    mem_b = jnp.transpose(memory, (1, 0, 2)).astype(f32)
    qpos_b = (jnp.zeros_like(tgt_b) if query_pos is None
              else jnp.transpose(query_pos, (1, 0, 2)).astype(f32))
    pos_b = (jnp.zeros_like(mem_b) if pos is None
             else jnp.transpose(pos, (1, 0, 2)).astype(f32))

    def row(v):                      # 1-D param -> (1, N) 2-D layout
        return v.reshape(1, -1).astype(f32)

    def rep(shape):                  # parameter block, replicated across the grid
        return pl.BlockSpec(shape, lambda b: (0, 0))

    weights = (
        params["sa_in_w"].astype(f32), row(params["sa_in_b"]),
        params["sa_out_w"].astype(f32), row(params["sa_out_b"]),
        params["ca_in_w"].astype(f32), row(params["ca_in_b"]),
        params["ca_out_w"].astype(f32), row(params["ca_out_b"]),
        params["ff_w1"].astype(f32), row(params["ff_b1"]),
        params["ff_w2"].astype(f32), row(params["ff_b2"]),
        row(params["ln1_g"]), row(params["ln1_b"]),
        row(params["ln2_g"]), row(params["ln2_b"]),
        row(params["ln3_g"]), row(params["ln3_b"]),
    )

    in_specs = [
        pl.BlockSpec((None, T, D), lambda b: (b, 0, 0)),   # tgt
        pl.BlockSpec((None, S, D), lambda b: (b, 0, 0)),   # memory
        pl.BlockSpec((None, T, D), lambda b: (b, 0, 0)),   # query_pos
        pl.BlockSpec((None, S, D), lambda b: (b, 0, 0)),   # pos
    ] + [rep(w.shape) for w in weights]

    out = pl.pallas_call(
        functools.partial(_decoder_layer_kernel, nhead=nhead, eps=eps),
        out_shape=jax.ShapeDtypeStruct((B, T, D), f32),
        grid=(B,),
        in_specs=in_specs,
        out_specs=pl.BlockSpec((None, T, D), lambda b: (b, 0, 0)),
        compiler_params=pltpu.CompilerParams(dimension_semantics=("parallel",)),
    )(tgt_b, mem_b, qpos_b, pos_b, *weights)

    return jnp.transpose(out, (1, 0, 2))     # back to (T, B, D)


# ---------------------------------------------------------------------------
# Pure-JAX reference (torch semantics) for a self-check
# ---------------------------------------------------------------------------

def _ref_mha(q_in, k_in, v_in, in_w, in_b, out_w, out_b, nhead):
    Lq, B, D = q_in.shape
    Lk = k_in.shape[0]
    dh = D // nhead
    hp = lax.Precision.HIGHEST
    q = jnp.einsum('lbd,ed->lbe', q_in, in_w[:D], precision=hp) + in_b[:D]
    k = jnp.einsum('lbd,ed->lbe', k_in, in_w[D:2 * D], precision=hp) + in_b[D:2 * D]
    v = jnp.einsum('lbd,ed->lbe', v_in, in_w[2 * D:], precision=hp) + in_b[2 * D:]
    q = q.reshape(Lq, B, nhead, dh)
    k = k.reshape(Lk, B, nhead, dh)
    v = v.reshape(Lk, B, nhead, dh)
    s = jnp.einsum('qbhd,kbhd->bhqk', q, k, precision=hp) / math.sqrt(dh)
    p = jax.nn.softmax(s, axis=-1)
    o = jnp.einsum('bhqk,kbhd->qbhd', p, v, precision=hp).reshape(Lq, B, D)
    return jnp.einsum('qbd,ed->qbe', o, out_w, precision=hp) + out_b


def _ref_ln(x, g, b, eps=1e-5):
    mu = jnp.mean(x, axis=-1, keepdims=True)
    var = jnp.mean(jnp.square(x - mu), axis=-1, keepdims=True)
    return (x - mu) / jnp.sqrt(var + eps) * g + b


def _ref_decoder_layer(tgt, memory, params, nhead, pos=None, query_pos=None):
    hp = lax.Precision.HIGHEST

    def wp(x, p):
        return x if p is None else x + p

    qk = wp(tgt, query_pos)
    t2 = _ref_mha(qk, qk, tgt, params["sa_in_w"], params["sa_in_b"],
                  params["sa_out_w"], params["sa_out_b"], nhead)
    tgt = _ref_ln(tgt + t2, params["ln1_g"], params["ln1_b"])
    t2 = _ref_mha(wp(tgt, query_pos), wp(memory, pos), memory,
                  params["ca_in_w"], params["ca_in_b"],
                  params["ca_out_w"], params["ca_out_b"], nhead)
    tgt = _ref_ln(tgt + t2, params["ln2_g"], params["ln2_b"])
    h = jax.nn.relu(jnp.einsum('qbd,fd->qbf', tgt, params["ff_w1"], precision=hp)
                    + params["ff_b1"])
    t2 = jnp.einsum('qbf,df->qbd', h, params["ff_w2"], precision=hp) + params["ff_b2"]
    return _ref_ln(tgt + t2, params["ln3_g"], params["ln3_b"])


# ---------------------------------------------------------------------------
# main
# ---------------------------------------------------------------------------

if __name__ == "__main__":
    d_model, nhead, dim_ff = 32, 4, 64
    T, S, B = 8, 16, 2     # tgt length, memory length, batch

    key = jax.random.PRNGKey(0)
    keys = jax.random.split(key, 24)
    it = iter(keys)

    def rand(shape, scale=0.02):
        return (scale * jax.random.normal(next(it), shape)).astype(jnp.float32)

    params = {
        # self attention
        "sa_in_w": rand((3 * d_model, d_model)),
        "sa_in_b": rand((3 * d_model,)),
        "sa_out_w": rand((d_model, d_model)),
        "sa_out_b": rand((d_model,)),
        # cross attention
        "ca_in_w": rand((3 * d_model, d_model)),
        "ca_in_b": rand((3 * d_model,)),
        "ca_out_w": rand((d_model, d_model)),
        "ca_out_b": rand((d_model,)),
        # feed forward
        "ff_w1": rand((dim_ff, d_model)),
        "ff_b1": rand((dim_ff,)),
        "ff_w2": rand((d_model, dim_ff)),
        "ff_b2": rand((d_model,)),
        # layer norms (gamma=1, beta=0 like fresh nn.LayerNorm)
        "ln1_g": jnp.ones((d_model,), jnp.float32),
        "ln1_b": jnp.zeros((d_model,), jnp.float32),
        "ln2_g": jnp.ones((d_model,), jnp.float32),
        "ln2_b": jnp.zeros((d_model,), jnp.float32),
        "ln3_g": jnp.ones((d_model,), jnp.float32),
        "ln3_b": jnp.zeros((d_model,), jnp.float32),
    }

    tgt = rand((T, B, d_model), scale=1.0)
    memory = rand((S, B, d_model), scale=1.0)
    query_pos = rand((T, B, d_model), scale=1.0)
    pos = rand((S, B, d_model), scale=1.0)

    out = transformer_decoder_layer(tgt, memory, params, nhead,
                                    pos=pos, query_pos=query_pos)
    out = jax.block_until_ready(out)

    assert out.shape == (T, B, d_model)
    assert bool(jnp.all(jnp.isfinite(out)))

    # self-check against a pure-JAX reference of the same forward_post math
    ref = _ref_decoder_layer(tgt, memory, params, nhead, pos=pos, query_pos=query_pos)
    ref = jax.block_until_ready(ref)
    max_err = float(jnp.max(jnp.abs(out - ref)))
    assert max_err < 2e-2, f"mismatch vs reference: {max_err}"

    print("KERNEL_OK")
</pallas_src>

<mosaic_0001>
module attributes {stable_mosaic.version = 11 : i64} {
  func.func @_decoder_layer_kernel(%arg0: i32, %arg1: memref<1x8x32xf32, #tpu.memory_space<vmem>>, %arg2: memref<1x16x32xf32, #tpu.memory_space<vmem>>, %arg3: memref<1x8x32xf32, #tpu.memory_space<vmem>>, %arg4: memref<1x16x32xf32, #tpu.memory_space<vmem>>, %arg5: memref<96x32xf32, #tpu.memory_space<vmem>>, %arg6: memref<1x96xf32, #tpu.memory_space<vmem>>, %arg7: memref<32x32xf32, #tpu.memory_space<vmem>>, %arg8: memref<1x32xf32, #tpu.memory_space<vmem>>, %arg9: memref<96x32xf32, #tpu.memory_space<vmem>>, %arg10: memref<1x96xf32, #tpu.memory_space<vmem>>, %arg11: memref<32x32xf32, #tpu.memory_space<vmem>>, %arg12: memref<1x32xf32, #tpu.memory_space<vmem>>, %arg13: memref<64x32xf32, #tpu.memory_space<vmem>>, %arg14: memref<1x64xf32, #tpu.memory_space<vmem>>, %arg15: memref<32x64xf32, #tpu.memory_space<vmem>>, %arg16: memref<1x32xf32, #tpu.memory_space<vmem>>, %arg17: memref<1x32xf32, #tpu.memory_space<vmem>>, %arg18: memref<1x32xf32, #tpu.memory_space<vmem>>, %arg19: memref<1x32xf32, #tpu.memory_space<vmem>>, %arg20: memref<1x32xf32, #tpu.memory_space<vmem>>, %arg21: memref<1x32xf32, #tpu.memory_space<vmem>>, %arg22: memref<1x32xf32, #tpu.memory_space<vmem>>, %arg23: memref<1x8x32xf32, #tpu.memory_space<vmem>>) attributes {dimension_semantics = [#tpu.dimension_semantics<parallel>], iteration_bounds = array<i64: 2>, scalar_prefetch = 0 : i64, scratch_operands = 0 : i64, tpu.core_type = #tpu.core_type<tc>, window_params = [{transform_indices = @transform_0, window_bounds = array<i64: 1, 8, 32>}, {transform_indices = @transform_1, window_bounds = array<i64: 1, 16, 32>}, {transform_indices = @transform_2, window_bounds = array<i64: 1, 8, 32>}, {transform_indices = @transform_3, window_bounds = array<i64: 1, 16, 32>}, {pipeline_mode = #tpu.pipeline_mode<synchronous>, transform_indices = @transform_4, window_bounds = array<i64: 96, 32>}, {pipeline_mode = #tpu.pipeline_mode<synchronous>, transform_indices = @transform_5, window_bounds = array<i64: 1, 96>}, {pipeline_mode = #tpu.pipeline_mode<synchronous>, transform_indices = @transform_6, window_bounds = array<i64: 32, 32>}, {pipeline_mode = #tpu.pipeline_mode<synchronous>, transform_indices = @transform_7, window_bounds = array<i64: 1, 32>}, {pipeline_mode = #tpu.pipeline_mode<synchronous>, transform_indices = @transform_8, window_bounds = array<i64: 96, 32>}, {pipeline_mode = #tpu.pipeline_mode<synchronous>, transform_indices = @transform_9, window_bounds = array<i64: 1, 96>}, {pipeline_mode = #tpu.pipeline_mode<synchronous>, transform_indices = @transform_10, window_bounds = array<i64: 32, 32>}, {pipeline_mode = #tpu.pipeline_mode<synchronous>, transform_indices = @transform_11, window_bounds = array<i64: 1, 32>}, {pipeline_mode = #tpu.pipeline_mode<synchronous>, transform_indices = @transform_12, window_bounds = array<i64: 64, 32>}, {pipeline_mode = #tpu.pipeline_mode<synchronous>, transform_indices = @transform_13, window_bounds = array<i64: 1, 64>}, {pipeline_mode = #tpu.pipeline_mode<synchronous>, transform_indices = @transform_14, window_bounds = array<i64: 32, 64>}, {pipeline_mode = #tpu.pipeline_mode<synchronous>, transform_indices = @transform_15, window_bounds = array<i64: 1, 32>}, {pipeline_mode = #tpu.pipeline_mode<synchronous>, transform_indices = @transform_16, window_bounds = array<i64: 1, 32>}, {pipeline_mode = #tpu.pipeline_mode<synchronous>, transform_indices = @transform_17, window_bounds = array<i64: 1, 32>}, {pipeline_mode = #tpu.pipeline_mode<synchronous>, transform_indices = @transform_18, window_bounds = array<i64: 1, 32>}, {pipeline_mode = #tpu.pipeline_mode<synchronous>, transform_indices = @transform_19, window_bounds = array<i64: 1, 32>}, {pipeline_mode = #tpu.pipeline_mode<synchronous>, transform_indices = @transform_20, window_bounds = array<i64: 1, 32>}, {pipeline_mode = #tpu.pipeline_mode<synchronous>, transform_indices = @transform_21, window_bounds = array<i64: 1, 32>}, {transform_indices = @transform_22, window_bounds = array<i64: 1, 8, 32>}]} {
    %c0 = arith.constant 0 : index
    %c0_0 = arith.constant 0 : index
    %c0_1 = arith.constant 0 : index
    %0 = vector.load %arg1[%c0, %c0_0, %c0_1] : memref<1x8x32xf32, #tpu.memory_space<vmem>>, vector<1x8x32xf32>
    %1 = vector.shape_cast %0 : vector<1x8x32xf32> to vector<8x32xf32>
    %c0_2 = arith.constant 0 : index
    %c0_3 = arith.constant 0 : index
    %c0_4 = arith.constant 0 : index
    %2 = vector.load %arg2[%c0_2, %c0_3, %c0_4] : memref<1x16x32xf32, #tpu.memory_space<vmem>>, vector<1x16x32xf32>
    %3 = vector.shape_cast %2 : vector<1x16x32xf32> to vector<16x32xf32>
    %c0_5 = arith.constant 0 : index
    %c0_6 = arith.constant 0 : index
    %c0_7 = arith.constant 0 : index
    %4 = vector.load %arg3[%c0_5, %c0_6, %c0_7] : memref<1x8x32xf32, #tpu.memory_space<vmem>>, vector<1x8x32xf32>
    %5 = vector.shape_cast %4 : vector<1x8x32xf32> to vector<8x32xf32>
    %c0_8 = arith.constant 0 : index
    %c0_9 = arith.constant 0 : index
    %c0_10 = arith.constant 0 : index
    %6 = vector.load %arg4[%c0_8, %c0_9, %c0_10] : memref<1x16x32xf32, #tpu.memory_space<vmem>>, vector<1x16x32xf32>
    %7 = vector.shape_cast %6 : vector<1x16x32xf32> to vector<16x32xf32>
    %8 = arith.addf %1, %5 : vector<8x32xf32>
    %c0_11 = arith.constant 0 : index
    %c0_12 = arith.constant 0 : index
    %9 = vector.load %arg5[%c0_11, %c0_12] : memref<96x32xf32, #tpu.memory_space<vmem>>, vector<96x32xf32>
    %c0_13 = arith.constant 0 : index
    %c0_14 = arith.constant 0 : index
    %10 = vector.load %arg6[%c0_13, %c0_14] : memref<1x96xf32, #tpu.memory_space<vmem>>, vector<1x96xf32>
    %c0_15 = arith.constant 0 : index
    %c0_16 = arith.constant 0 : index
    %11 = vector.load %arg7[%c0_15, %c0_16] : memref<32x32xf32, #tpu.memory_space<vmem>>, vector<32x32xf32>
    %c0_17 = arith.constant 0 : index
    %c0_18 = arith.constant 0 : index
    %12 = vector.load %arg8[%c0_17, %c0_18] : memref<1x32xf32, #tpu.memory_space<vmem>>, vector<1x32xf32>
    %13 = vector.extract_strided_slice %9 {offsets = [0, 0], sizes = [64, 32], strides = [1, 1]} : vector<96x32xf32> to vector<64x32xf32>
    %cst = arith.constant dense<0.000000e+00> : vector<8x64xf32>
    %14 = tpu.matmul %8, %13, %cst {dimension_numbers = #tpu.dot_dimension_numbers<[1], [1], [0], [0], [0, 0, 1, 0], [], []>} : vector<8x32xf32>, vector<64x32xf32>, vector<8x64xf32> -> vector<8x64xf32>
    %15 = vector.extract_strided_slice %10 {offsets = [0, 0], sizes = [1, 64], strides = [1, 1]} : vector<1x96xf32> to vector<1x64xf32>
    %16 = vector.broadcast %15 : vector<1x64xf32> to vector<8x64xf32>
    %17 = arith.addf %14, %16 : vector<8x64xf32>
    %18 = vector.extract_strided_slice %17 {offsets = [0, 0], sizes = [8, 32], strides = [1, 1]} : vector<8x64xf32> to vector<8x32xf32>
    %19 = vector.extract_strided_slice %17 {offsets = [0, 32], sizes = [8, 32], strides = [1, 1]} : vector<8x64xf32> to vector<8x32xf32>
    %20 = vector.extract_strided_slice %9 {offsets = [64, 0], sizes = [32, 32], strides = [1, 1]} : vector<96x32xf32> to vector<32x32xf32>
    %cst_19 = arith.constant dense<0.000000e+00> : vector<8x32xf32>
    %21 = tpu.matmul %1, %20, %cst_19 {dimension_numbers = #tpu.dot_dimension_numbers<[1], [1], [0], [0], [0, 0, 1, 0], [], []>} : vector<8x32xf32>, vector<32x32xf32>, vector<8x32xf32> -> vector<8x32xf32>
    %22 = vector.extract_strided_slice %10 {offsets = [0, 64], sizes = [1, 32], strides = [1, 1]} : vector<1x96xf32> to vector<1x32xf32>
    %23 = vector.broadcast %22 : vector<1x32xf32> to vector<8x32xf32>
    %24 = arith.addf %21, %23 : vector<8x32xf32>
    %cst_20 = arith.constant 0.000000e+00 : f32
    %25 = vector.broadcast %cst_20 : f32 to vector<8x32xf32>
    %26 = vector.extract_strided_slice %18 {offsets = [0, 0], sizes = [8, 8], strides = [1, 1]} : vector<8x32xf32> to vector<8x8xf32>
    %27 = vector.extract_strided_slice %19 {offsets = [0, 0], sizes = [8, 8], strides = [1, 1]} : vector<8x32xf32> to vector<8x8xf32>
    %28 = vector.extract_strided_slice %24 {offsets = [0, 0], sizes = [8, 8], strides = [1, 1]} : vector<8x32xf32> to vector<8x8xf32>
    %cst_21 = arith.constant dense<0.000000e+00> : vector<8x8xf32>
    %29 = tpu.matmul %26, %27, %cst_21 {dimension_numbers = #tpu.dot_dimension_numbers<[1], [1], [0], [0], [0, 0, 1, 0], [], []>} : vector<8x8xf32>, vector<8x8xf32>, vector<8x8xf32> -> vector<8x8xf32>
    %cst_22 = arith.constant 0.353553385 : f32
    %30 = vector.broadcast %cst_22 : f32 to vector<8x8xf32>
    %31 = arith.mulf %29, %30 : vector<8x8xf32>
    %cst_23 = arith.constant dense<0xFF800000> : vector<8xf32>
    %32 = vector.multi_reduction <maximumf>, %31, %cst_23 [1] : vector<8x8xf32> to vector<8xf32>
    %33 = vector.shape_cast %32 : vector<8xf32> to vector<8x1xf32>
    %34 = vector.broadcast %33 : vector<8x1xf32> to vector<8x8xf32>
    %35 = arith.subf %31, %34 : vector<8x8xf32>
    %36 = math.exp %35 : vector<8x8xf32>
    %cst_24 = arith.constant dense<0.000000e+00> : vector<8xf32>
    %37 = vector.multi_reduction <add>, %36, %cst_24 [1] : vector<8x8xf32> to vector<8xf32>
    %38 = vector.shape_cast %37 : vector<8xf32> to vector<8x1xf32>
    %39 = vector.broadcast %38 : vector<8x1xf32> to vector<8x8xf32>
    %40 = arith.divf %36, %39 : vector<8x8xf32>
    %cst_25 = arith.constant dense<0.000000e+00> : vector<8x8xf32>
    %41 = tpu.matmul %40, %28, %cst_25 {dimension_numbers = #tpu.dot_dimension_numbers<[1], [0], [0], [1], [0, 0, 1, 1], [], []>} : vector<8x8xf32>, vector<8x8xf32>, vector<8x8xf32> -> vector<8x8xf32>
    %42 = vector.extract_strided_slice %11 {offsets = [0, 0], sizes = [32, 8], strides = [1, 1]} : vector<32x32xf32> to vector<32x8xf32>
    %cst_26 = arith.constant dense<0.000000e+00> : vector<8x32xf32>
    %43 = tpu.matmul %41, %42, %cst_26 {dimension_numbers = #tpu.dot_dimension_numbers<[1], [1], [0], [0], [0, 0, 1, 0], [], []>} : vector<8x8xf32>, vector<32x8xf32>, vector<8x32xf32> -> vector<8x32xf32>
    %44 = arith.addf %25, %43 : vector<8x32xf32>
    %45 = vector.extract_strided_slice %18 {offsets = [0, 8], sizes = [8, 8], strides = [1, 1]} : vector<8x32xf32> to vector<8x8xf32>
    %46 = vector.extract_strided_slice %19 {offsets = [0, 8], sizes = [8, 8], strides = [1, 1]} : vector<8x32xf32> to vector<8x8xf32>
    %47 = vector.extract_strided_slice %24 {offsets = [0, 8], sizes = [8, 8], strides = [1, 1]} : vector<8x32xf32> to vector<8x8xf32>
    %cst_27 = arith.constant dense<0.000000e+00> : vector<8x8xf32>
    %48 = tpu.matmul %45, %46, %cst_27 {dimension_numbers = #tpu.dot_dimension_numbers<[1], [1], [0], [0], [0, 0, 1, 0], [], []>} : vector<8x8xf32>, vector<8x8xf32>, vector<8x8xf32> -> vector<8x8xf32>
    %cst_28 = arith.constant 0.353553385 : f32
    %49 = vector.broadcast %cst_28 : f32 to vector<8x8xf32>
    %50 = arith.mulf %48, %49 : vector<8x8xf32>
    %cst_29 = arith.constant dense<0xFF800000> : vector<8xf32>
    %51 = vector.multi_reduction <maximumf>, %50, %cst_29 [1] : vector<8x8xf32> to vector<8xf32>
    %52 = vector.shape_cast %51 : vector<8xf32> to vector<8x1xf32>
    %53 = vector.broadcast %52 : vector<8x1xf32> to vector<8x8xf32>
    %54 = arith.subf %50, %53 : vector<8x8xf32>
    %55 = math.exp %54 : vector<8x8xf32>
    %cst_30 = arith.constant dense<0.000000e+00> : vector<8xf32>
    %56 = vector.multi_reduction <add>, %55, %cst_30 [1] : vector<8x8xf32> to vector<8xf32>
    %57 = vector.shape_cast %56 : vector<8xf32> to vector<8x1xf32>
    %58 = vector.broadcast %57 : vector<8x1xf32> to vector<8x8xf32>
    %59 = arith.divf %55, %58 : vector<8x8xf32>
    %cst_31 = arith.constant dense<0.000000e+00> : vector<8x8xf32>
    %60 = tpu.matmul %59, %47, %cst_31 {dimension_numbers = #tpu.dot_dimension_numbers<[1], [0], [0], [1], [0, 0, 1, 1], [], []>} : vector<8x8xf32>, vector<8x8xf32>, vector<8x8xf32> -> vector<8x8xf32>
    %61 = vector.extract_strided_slice %11 {offsets = [0, 8], sizes = [32, 8], strides = [1, 1]} : vector<32x32xf32> to vector<32x8xf32>
    %cst_32 = arith.constant dense<0.000000e+00> : vector<8x32xf32>
    %62 = tpu.matmul %60, %61, %cst_32 {dimension_numbers = #tpu.dot_dimension_numbers<[1], [1], [0], [0], [0, 0, 1, 0], [], []>} : vector<8x8xf32>, vector<32x8xf32>, vector<8x32xf32> -> vector<8x32xf32>
    %63 = arith.addf %44, %62 : vector<8x32xf32>
    %64 = vector.extract_strided_slice %18 {offsets = [0, 16], sizes = [8, 8], strides = [1, 1]} : vector<8x32xf32> to vector<8x8xf32>
    %65 = vector.extract_strided_slice %19 {offsets = [0, 16], sizes = [8, 8], strides = [1, 1]} : vector<8x32xf32> to vector<8x8xf32>
    %66 = vector.extract_strided_slice %24 {offsets = [0, 16], sizes = [8, 8], strides = [1, 1]} : vector<8x32xf32> to vector<8x8xf32>
    %cst_33 = arith.constant dense<0.000000e+00> : vector<8x8xf32>
    %67 = tpu.matmul %64, %65, %cst_33 {dimension_numbers = #tpu.dot_dimension_numbers<[1], [1], [0], [0], [0, 0, 1, 0], [], []>} : vector<8x8xf32>, vector<8x8xf32>, vector<8x8xf32> -> vector<8x8xf32>
    %cst_34 = arith.constant 0.353553385 : f32
    %68 = vector.broadcast %cst_34 : f32 to vector<8x8xf32>
    %69 = arith.mulf %67, %68 : vector<8x8xf32>
    %cst_35 = arith.constant dense<0xFF800000> : vector<8xf32>
    %70 = vector.multi_reduction <maximumf>, %69, %cst_35 [1] : vector<8x8xf32> to vector<8xf32>
    %71 = vector.shape_cast %70 : vector<8xf32> to vector<8x1xf32>
    %72 = vector.broadcast %71 : vector<8x1xf32> to vector<8x8xf32>
    %73 = arith.subf %69, %72 : vector<8x8xf32>
    %74 = math.exp %73 : vector<8x8xf32>
    %cst_36 = arith.constant dense<0.000000e+00> : vector<8xf32>
    %75 = vector.multi_reduction <add>, %74, %cst_36 [1] : vector<8x8xf32> to vector<8xf32>
    %76 = vector.shape_cast %75 : vector<8xf32> to vector<8x1xf32>
    %77 = vector.broadcast %76 : vector<8x1xf32> to vector<8x8xf32>
    %78 = arith.divf %74, %77 : vector<8x8xf32>
    %cst_37 = arith.constant dense<0.000000e+00> : vector<8x8xf32>
    %79 = tpu.matmul %78, %66, %cst_37 {dimension_numbers = #tpu.dot_dimension_numbers<[1], [0], [0], [1], [0, 0, 1, 1], [], []>} : vector<8x8xf32>, vector<8x8xf32>, vector<8x8xf32> -> vector<8x8xf32>
    %80 = vector.extract_strided_slice %11 {offsets = [0, 16], sizes = [32, 8], strides = [1, 1]} : vector<32x32xf32> to vector<32x8xf32>
    %cst_38 = arith.constant dense<0.000000e+00> : vector<8x32xf32>
    %81 = tpu.matmul %79, %80, %cst_38 {dimension_numbers = #tpu.dot_dimension_numbers<[1], [1], [0], [0], [0, 0, 1, 0], [], []>} : vector<8x8xf32>, vector<32x8xf32>, vector<8x32xf32> -> vector<8x32xf32>
    %82 = arith.addf %63, %81 : vector<8x32xf32>
    %83 = vector.extract_strided_slice %18 {offsets = [0, 24], sizes = [8, 8], strides = [1, 1]} : vector<8x32xf32> to vector<8x8xf32>
    %84 = vector.extract_strided_slice %19 {offsets = [0, 24], sizes = [8, 8], strides = [1, 1]} : vector<8x32xf32> to vector<8x8xf32>
    %85 = vector.extract_strided_slice %24 {offsets = [0, 24], sizes = [8, 8], strides = [1, 1]} : vector<8x32xf32> to vector<8x8xf32>
    %cst_39 = arith.constant dense<0.000000e+00> : vector<8x8xf32>
    %86 = tpu.matmul %83, %84, %cst_39 {dimension_numbers = #tpu.dot_dimension_numbers<[1], [1], [0], [0], [0, 0, 1, 0], [], []>} : vector<8x8xf32>, vector<8x8xf32>, vector<8x8xf32> -> vector<8x8xf32>
    %cst_40 = arith.constant 0.353553385 : f32
    %87 = vector.broadcast %cst_40 : f32 to vector<8x8xf32>
    %88 = arith.mulf %86, %87 : vector<8x8xf32>
    %cst_41 = arith.constant dense<0xFF800000> : vector<8xf32>
    %89 = vector.multi_reduction <maximumf>, %88, %cst_41 [1] : vector<8x8xf32> to vector<8xf32>
    %90 = vector.shape_cast %89 : vector<8xf32> to vector<8x1xf32>
    %91 = vector.broadcast %90 : vector<8x1xf32> to vector<8x8xf32>
    %92 = arith.subf %88, %91 : vector<8x8xf32>
    %93 = math.exp %92 : vector<8x8xf32>
    %cst_42 = arith.constant dense<0.000000e+00> : vector<8xf32>
    %94 = vector.multi_reduction <add>, %93, %cst_42 [1] : vector<8x8xf32> to vector<8xf32>
    %95 = vector.shape_cast %94 : vector<8xf32> to vector<8x1xf32>
    %96 = vector.broadcast %95 : vector<8x1xf32> to vector<8x8xf32>
    %97 = arith.divf %93, %96 : vector<8x8xf32>
    %cst_43 = arith.constant dense<0.000000e+00> : vector<8x8xf32>
    %98 = tpu.matmul %97, %85, %cst_43 {dimension_numbers = #tpu.dot_dimension_numbers<[1], [0], [0], [1], [0, 0, 1, 1], [], []>} : vector<8x8xf32>, vector<8x8xf32>, vector<8x8xf32> -> vector<8x8xf32>
    %99 = vector.extract_strided_slice %11 {offsets = [0, 24], sizes = [32, 8], strides = [1, 1]} : vector<32x32xf32> to vector<32x8xf32>
    %cst_44 = arith.constant dense<0.000000e+00> : vector<8x32xf32>
    %100 = tpu.matmul %98, %99, %cst_44 {dimension_numbers = #tpu.dot_dimension_numbers<[1], [1], [0], [0], [0, 0, 1, 0], [], []>} : vector<8x8xf32>, vector<32x8xf32>, vector<8x32xf32> -> vector<8x32xf32>
    %101 = arith.addf %82, %100 : vector<8x32xf32>
    %102 = vector.broadcast %12 : vector<1x32xf32> to vector<8x32xf32>
    %103 = arith.addf %101, %102 : vector<8x32xf32>
    %104 = arith.addf %1, %103 : vector<8x32xf32>
    %c0_45 = arith.constant 0 : index
    %c0_46 = arith.constant 0 : index
    %105 = vector.load %arg17[%c0_45, %c0_46] : memref<1x32xf32, #tpu.memory_space<vmem>>, vector<1x32xf32>
    %c0_47 = arith.constant 0 : index
    %c0_48 = arith.constant 0 : index
    %106 = vector.load %arg18[%c0_47, %c0_48] : memref<1x32xf32, #tpu.memory_space<vmem>>, vector<1x32xf32>
    %cst_49 = arith.constant dense<0.000000e+00> : vector<8xf32>
    %107 = vector.multi_reduction <add>, %104, %cst_49 [1] : vector<8x32xf32> to vector<8xf32>
    %108 = vector.shape_cast %107 : vector<8xf32> to vector<8x1xf32>
    %cst_50 = arith.constant 3.200000e+01 : f32
    %109 = vector.broadcast %cst_50 : f32 to vector<8x1xf32>
    %110 = arith.divf %108, %109 : vector<8x1xf32>
    %111 = vector.broadcast %110 : vector<8x1xf32> to vector<8x32xf32>
    %112 = arith.subf %104, %111 : vector<8x32xf32>
    %113 = arith.mulf %112, %112 : vector<8x32xf32>
    %cst_51 = arith.constant dense<0.000000e+00> : vector<8xf32>
    %114 = vector.multi_reduction <add>, %113, %cst_51 [1] : vector<8x32xf32> to vector<8xf32>
    %115 = vector.shape_cast %114 : vector<8xf32> to vector<8x1xf32>
    %cst_52 = arith.constant 3.200000e+01 : f32
    %116 = vector.broadcast %cst_52 : f32 to vector<8x1xf32>
    %117 = arith.divf %115, %116 : vector<8x1xf32>
    %118 = vector.broadcast %110 : vector<8x1xf32> to vector<8x32xf32>
    %119 = arith.subf %104, %118 : vector<8x32xf32>
    %cst_53 = arith.constant 9.99999974E-6 : f32
    %120 = vector.broadcast %cst_53 : f32 to vector<8x1xf32>
    %121 = arith.addf %117, %120 : vector<8x1xf32>
    %122 = math.rsqrt %121 : vector<8x1xf32>
    %123 = vector.broadcast %122 : vector<8x1xf32> to vector<8x32xf32>
    %124 = arith.mulf %119, %123 : vector<8x32xf32>
    %125 = vector.broadcast %105 : vector<1x32xf32> to vector<8x32xf32>
    %126 = arith.mulf %124, %125 : vector<8x32xf32>
    %127 = vector.broadcast %106 : vector<1x32xf32> to vector<8x32xf32>
    %128 = arith.addf %126, %127 : vector<8x32xf32>
    %129 = arith.addf %128, %5 : vector<8x32xf32>
    %130 = arith.addf %3, %7 : vector<16x32xf32>
    %c0_54 = arith.constant 0 : index
    %c0_55 = arith.constant 0 : index
    %131 = vector.load %arg9[%c0_54, %c0_55] : memref<96x32xf32, #tpu.memory_space<vmem>>, vector<96x32xf32>
    %c0_56 = arith.constant 0 : index
    %c0_57 = arith.constant 0 : index
    %132 = vector.load %arg10[%c0_56, %c0_57] : memref<1x96xf32, #tpu.memory_space<vmem>>, vector<1x96xf32>
    %c0_58 = arith.constant 0 : index
    %c0_59 = arith.constant 0 : index
    %133 = vector.load %arg11[%c0_58, %c0_59] : memref<32x32xf32, #tpu.memory_space<vmem>>, vector<32x32xf32>
    %c0_60 = arith.constant 0 : index
    %c0_61 = arith.constant 0 : index
    %134 = vector.load %arg12[%c0_60, %c0_61] : memref<1x32xf32, #tpu.memory_space<vmem>>, vector<1x32xf32>
    %135 = vector.extract_strided_slice %131 {offsets = [0, 0], sizes = [32, 32], strides = [1, 1]} : vector<96x32xf32> to vector<32x32xf32>
    %cst_62 = arith.constant dense<0.000000e+00> : vector<8x32xf32>
    %136 = tpu.matmul %129, %135, %cst_62 {dimension_numbers = #tpu.dot_dimension_numbers<[1], [1], [0], [0], [0, 0, 1, 0], [], []>} : vector<8x32xf32>, vector<32x32xf32>, vector<8x32xf32> -> vector<8x32xf32>
    %137 = vector.extract_strided_slice %132 {offsets = [0, 0], sizes = [1, 32], strides = [1, 1]} : vector<1x96xf32> to vector<1x32xf32>
    %138 = vector.broadcast %137 : vector<1x32xf32> to vector<8x32xf32>
    %139 = arith.addf %136, %138 : vector<8x32xf32>
    %140 = vector.extract_strided_slice %131 {offsets = [32, 0], sizes = [32, 32], strides = [1, 1]} : vector<96x32xf32> to vector<32x32xf32>
    %cst_63 = arith.constant dense<0.000000e+00> : vector<16x32xf32>
    %141 = tpu.matmul %130, %140, %cst_63 {dimension_numbers = #tpu.dot_dimension_numbers<[1], [1], [0], [0], [0, 0, 1, 0], [], []>} : vector<16x32xf32>, vector<32x32xf32>, vector<16x32xf32> -> vector<16x32xf32>
    %142 = vector.extract_strided_slice %132 {offsets = [0, 32], sizes = [1, 32], strides = [1, 1]} : vector<1x96xf32> to vector<1x32xf32>
    %143 = vector.broadcast %142 : vector<1x32xf32> to vector<16x32xf32>
    %144 = arith.addf %141, %143 : vector<16x32xf32>
    %145 = vector.extract_strided_slice %131 {offsets = [64, 0], sizes = [32, 32], strides = [1, 1]} : vector<96x32xf32> to vector<32x32xf32>
    %cst_64 = arith.constant dense<0.000000e+00> : vector<16x32xf32>
    %146 = tpu.matmul %3, %145, %cst_64 {dimension_numbers = #tpu.dot_dimension_numbers<[1], [1], [0], [0], [0, 0, 1, 0], [], []>} : vector<16x32xf32>, vector<32x32xf32>, vector<16x32xf32> -> vector<16x32xf32>
    %147 = vector.extract_strided_slice %132 {offsets = [0, 64], sizes = [1, 32], strides = [1, 1]} : vector<1x96xf32> to vector<1x32xf32>
    %148 = vector.broadcast %147 : vector<1x32xf32> to vector<16x32xf32>
    %149 = arith.addf %146, %148 : vector<16x32xf32>
    %cst_65 = arith.constant 0.000000e+00 : f32
    %150 = vector.broadcast %cst_65 : f32 to vector<8x32xf32>
    %151 = vector.extract_strided_slice %139 {offsets = [0, 0], sizes = [8, 8], strides = [1, 1]} : vector<8x32xf32> to vector<8x8xf32>
    %152 = vector.extract_strided_slice %144 {offsets = [0, 0], sizes = [16, 8], strides = [1, 1]} : vector<16x32xf32> to vector<16x8xf32>
    %153 = vector.extract_strided_slice %149 {offsets = [0, 0], sizes = [16, 8], strides = [1, 1]} : vector<16x32xf32> to vector<16x8xf32>
    %cst_66 = arith.constant dense<0.000000e+00> : vector<8x16xf32>
    %154 = tpu.matmul %151, %152, %cst_66 {dimension_numbers = #tpu.dot_dimension_numbers<[1], [1], [0], [0], [0, 0, 1, 0], [], []>} : vector<8x8xf32>, vector<16x8xf32>, vector<8x16xf32> -> vector<8x16xf32>
    %cst_67 = arith.constant 0.353553385 : f32
    %155 = vector.broadcast %cst_67 : f32 to vector<8x16xf32>
    %156 = arith.mulf %154, %155 : vector<8x16xf32>
    %cst_68 = arith.constant dense<0xFF800000> : vector<8xf32>
    %157 = vector.multi_reduction <maximumf>, %156, %cst_68 [1] : vector<8x16xf32> to vector<8xf32>
    %158 = vector.shape_cast %157 : vector<8xf32> to vector<8x1xf32>
    %159 = vector.broadcast %158 : vector<8x1xf32> to vector<8x16xf32>
    %160 = arith.subf %156, %159 : vector<8x16xf32>
    %161 = math.exp %160 : vector<8x16xf32>
    %cst_69 = arith.constant dense<0.000000e+00> : vector<8xf32>
    %162 = vector.multi_reduction <add>, %161, %cst_69 [1] : vector<8x16xf32> to vector<8xf32>
    %163 = vector.shape_cast %162 : vector<8xf32> to vector<8x1xf32>
    %164 = vector.broadcast %163 : vector<8x1xf32> to vector<8x16xf32>
    %165 = arith.divf %161, %164 : vector<8x16xf32>
    %cst_70 = arith.constant dense<0.000000e+00> : vector<8x8xf32>
    %166 = tpu.matmul %165, %153, %cst_70 {dimension_numbers = #tpu.dot_dimension_numbers<[1], [0], [0], [1], [0, 0, 1, 1], [], []>} : vector<8x16xf32>, vector<16x8xf32>, vector<8x8xf32> -> vector<8x8xf32>
    %167 = vector.extract_strided_slice %133 {offsets = [0, 0], sizes = [32, 8], strides = [1, 1]} : vector<32x32xf32> to vector<32x8xf32>
    %cst_71 = arith.constant dense<0.000000e+00> : vector<8x32xf32>
    %168 = tpu.matmul %166, %167, %cst_71 {dimension_numbers = #tpu.dot_dimension_numbers<[1], [1], [0], [0], [0, 0, 1, 0], [], []>} : vector<8x8xf32>, vector<32x8xf32>, vector<8x32xf32> -> vector<8x32xf32>
    %169 = arith.addf %150, %168 : vector<8x32xf32>
    %170 = vector.extract_strided_slice %139 {offsets = [0, 8], sizes = [8, 8], strides = [1, 1]} : vector<8x32xf32> to vector<8x8xf32>
    %171 = vector.extract_strided_slice %144 {offsets = [0, 8], sizes = [16, 8], strides = [1, 1]} : vector<16x32xf32> to vector<16x8xf32>
    %172 = vector.extract_strided_slice %149 {offsets = [0, 8], sizes = [16, 8], strides = [1, 1]} : vector<16x32xf32> to vector<16x8xf32>
    %cst_72 = arith.constant dense<0.000000e+00> : vector<8x16xf32>
    %173 = tpu.matmul %170, %171, %cst_72 {dimension_numbers = #tpu.dot_dimension_numbers<[1], [1], [0], [0], [0, 0, 1, 0], [], []>} : vector<8x8xf32>, vector<16x8xf32>, vector<8x16xf32> -> vector<8x16xf32>
    %cst_73 = arith.constant 0.353553385 : f32
    %174 = vector.broadcast %cst_73 : f32 to vector<8x16xf32>
    %175 = arith.mulf %173, %174 : vector<8x16xf32>
    %cst_74 = arith.constant dense<0xFF800000> : vector<8xf32>
    %176 = vector.multi_reduction <maximumf>, %175, %cst_74 [1] : vector<8x16xf32> to vector<8xf32>
    %177 = vector.shape_cast %176 : vector<8xf32> to vector<8x1xf32>
    %178 = vector.broadcast %177 : vector<8x1xf32> to vector<8x16xf32>
    %179 = arith.subf %175, %178 : vector<8x16xf32>
    %180 = math.exp %179 : vector<8x16xf32>
    %cst_75 = arith.constant dense<0.000000e+00> : vector<8xf32>
    %181 = vector.multi_reduction <add>, %180, %cst_75 [1] : vector<8x16xf32> to vector<8xf32>
    %182 = vector.shape_cast %181 : vector<8xf32> to vector<8x1xf32>
    %183 = vector.broadcast %182 : vector<8x1xf32> to vector<8x16xf32>
    %184 = arith.divf %180, %183 : vector<8x16xf32>
    %cst_76 = arith.constant dense<0.000000e+00> : vector<8x8xf32>
    %185 = tpu.matmul %184, %172, %cst_76 {dimension_numbers = #tpu.dot_dimension_numbers<[1], [0], [0], [1], [0, 0, 1, 1], [], []>} : vector<8x16xf32>, vector<16x8xf32>, vector<8x8xf32> -> vector<8x8xf32>
    %186 = vector.extract_strided_slice %133 {offsets = [0, 8], sizes = [32, 8], strides = [1, 1]} : vector<32x32xf32> to vector<32x8xf32>
    %cst_77 = arith.constant dense<0.000000e+00> : vector<8x32xf32>
    %187 = tpu.matmul %185, %186, %cst_77 {dimension_numbers = #tpu.dot_dimension_numbers<[1], [1], [0], [0], [0, 0, 1, 0], [], []>} : vector<8x8xf32>, vector<32x8xf32>, vector<8x32xf32> -> vector<8x32xf32>
    %188 = arith.addf %169, %187 : vector<8x32xf32>
    %189 = vector.extract_strided_slice %139 {offsets = [0, 16], sizes = [8, 8], strides = [1, 1]} : vector<8x32xf32> to vector<8x8xf32>
    %190 = vector.extract_strided_slice %144 {offsets = [0, 16], sizes = [16, 8], strides = [1, 1]} : vector<16x32xf32> to vector<16x8xf32>
    %191 = vector.extract_strided_slice %149 {offsets = [0, 16], sizes = [16, 8], strides = [1, 1]} : vector<16x32xf32> to vector<16x8xf32>
    %cst_78 = arith.constant dense<0.000000e+00> : vector<8x16xf32>
    %192 = tpu.matmul %189, %190, %cst_78 {dimension_numbers = #tpu.dot_dimension_numbers<[1], [1], [0], [0], [0, 0, 1, 0], [], []>} : vector<8x8xf32>, vector<16x8xf32>, vector<8x16xf32> -> vector<8x16xf32>
    %cst_79 = arith.constant 0.353553385 : f32
    %193 = vector.broadcast %cst_79 : f32 to vector<8x16xf32>
    %194 = arith.mulf %192, %193 : vector<8x16xf32>
    %cst_80 = arith.constant dense<0xFF800000> : vector<8xf32>
    %195 = vector.multi_reduction <maximumf>, %194, %cst_80 [1] : vector<8x16xf32> to vector<8xf32>
    %196 = vector.shape_cast %195 : vector<8xf32> to vector<8x1xf32>
    %197 = vector.broadcast %196 : vector<8x1xf32> to vector<8x16xf32>
    %198 = arith.subf %194, %197 : vector<8x16xf32>
    %199 = math.exp %198 : vector<8x16xf32>
    %cst_81 = arith.constant dense<0.000000e+00> : vector<8xf32>
    %200 = vector.multi_reduction <add>, %199, %cst_81 [1] : vector<8x16xf32> to vector<8xf32>
    %201 = vector.shape_cast %200 : vector<8xf32> to vector<8x1xf32>
    %202 = vector.broadcast %201 : vector<8x1xf32> to vector<8x16xf32>
    %203 = arith.divf %199, %202 : vector<8x16xf32>
    %cst_82 = arith.constant dense<0.000000e+00> : vector<8x8xf32>
    %204 = tpu.matmul %203, %191, %cst_82 {dimension_numbers = #tpu.dot_dimension_numbers<[1], [0], [0], [1], [0, 0, 1, 1], [], []>} : vector<8x16xf32>, vector<16x8xf32>, vector<8x8xf32> -> vector<8x8xf32>
    %205 = vector.extract_strided_slice %133 {offsets = [0, 16], sizes = [32, 8], strides = [1, 1]} : vector<32x32xf32> to vector<32x8xf32>
    %cst_83 = arith.constant dense<0.000000e+00> : vector<8x32xf32>
    %206 = tpu.matmul %204, %205, %cst_83 {dimension_numbers = #tpu.dot_dimension_numbers<[1], [1], [0], [0], [0, 0, 1, 0], [], []>} : vector<8x8xf32>, vector<32x8xf32>, vector<8x32xf32> -> vector<8x32xf32>
    %207 = arith.addf %188, %206 : vector<8x32xf32>
    %208 = vector.extract_strided_slice %139 {offsets = [0, 24], sizes = [8, 8], strides = [1, 1]} : vector<8x32xf32> to vector<8x8xf32>
    %209 = vector.extract_strided_slice %144 {offsets = [0, 24], sizes = [16, 8], strides = [1, 1]} : vector<16x32xf32> to vector<16x8xf32>
    %210 = vector.extract_strided_slice %149 {offsets = [0, 24], sizes = [16, 8], strides = [1, 1]} : vector<16x32xf32> to vector<16x8xf32>
    %cst_84 = arith.constant dense<0.000000e+00> : vector<8x16xf32>
    %211 = tpu.matmul %208, %209, %cst_84 {dimension_numbers = #tpu.dot_dimension_numbers<[1], [1], [0], [0], [0, 0, 1, 0], [], []>} : vector<8x8xf32>, vector<16x8xf32>, vector<8x16xf32> -> vector<8x16xf32>
    %cst_85 = arith.constant 0.353553385 : f32
    %212 = vector.broadcast %cst_85 : f32 to vector<8x16xf32>
    %213 = arith.mulf %211, %212 : vector<8x16xf32>
    %cst_86 = arith.constant dense<0xFF800000> : vector<8xf32>
    %214 = vector.multi_reduction <maximumf>, %213, %cst_86 [1] : vector<8x16xf32> to vector<8xf32>
    %215 = vector.shape_cast %214 : vector<8xf32> to vector<8x1xf32>
    %216 = vector.broadcast %215 : vector<8x1xf32> to vector<8x16xf32>
    %217 = arith.subf %213, %216 : vector<8x16xf32>
    %218 = math.exp %217 : vector<8x16xf32>
    %cst_87 = arith.constant dense<0.000000e+00> : vector<8xf32>
    %219 = vector.multi_reduction <add>, %218, %cst_87 [1] : vector<8x16xf32> to vector<8xf32>
    %220 = vector.shape_cast %219 : vector<8xf32> to vector<8x1xf32>
    %221 = vector.broadcast %220 : vector<8x1xf32> to vector<8x16xf32>
    %222 = arith.divf %218, %221 : vector<8x16xf32>
    %cst_88 = arith.constant dense<0.000000e+00> : vector<8x8xf32>
    %223 = tpu.matmul %222, %210, %cst_88 {dimension_numbers = #tpu.dot_dimension_numbers<[1], [0], [0], [1], [0, 0, 1, 1], [], []>} : vector<8x16xf32>, vector<16x8xf32>, vector<8x8xf32> -> vector<8x8xf32>
    %224 = vector.extract_strided_slice %133 {offsets = [0, 24], sizes = [32, 8], strides = [1, 1]} : vector<32x32xf32> to vector<32x8xf32>
    %cst_89 = arith.constant dense<0.000000e+00> : vector<8x32xf32>
    %225 = tpu.matmul %223, %224, %cst_89 {dimension_numbers = #tpu.dot_dimension_numbers<[1], [1], [0], [0], [0, 0, 1, 0], [], []>} : vector<8x8xf32>, vector<32x8xf32>, vector<8x32xf32> -> vector<8x32xf32>
    %226 = arith.addf %207, %225 : vector<8x32xf32>
    %227 = vector.broadcast %134 : vector<1x32xf32> to vector<8x32xf32>
    %228 = arith.addf %226, %227 : vector<8x32xf32>
    %229 = arith.addf %128, %228 : vector<8x32xf32>
    %c0_90 = arith.constant 0 : index
    %c0_91 = arith.constant 0 : index
    %230 = vector.load %arg19[%c0_90, %c0_91] : memref<1x32xf32, #tpu.memory_space<vmem>>, vector<1x32xf32>
    %c0_92 = arith.constant 0 : index
    %c0_93 = arith.constant 0 : index
    %231 = vector.load %arg20[%c0_92, %c0_93] : memref<1x32xf32, #tpu.memory_space<vmem>>, vector<1x32xf32>
    %cst_94 = arith.constant dense<0.000000e+00> : vector<8xf32>
    %232 = vector.multi_reduction <add>, %229, %cst_94 [1] : vector<8x32xf32> to vector<8xf32>
    %233 = vector.shape_cast %232 : vector<8xf32> to vector<8x1xf32>
    %cst_95 = arith.constant 3.200000e+01 : f32
    %234 = vector.broadcast %cst_95 : f32 to vector<8x1xf32>
    %235 = arith.divf %233, %234 : vector<8x1xf32>
    %236 = vector.broadcast %235 : vector<8x1xf32> to vector<8x32xf32>
    %237 = arith.subf %229, %236 : vector<8x32xf32>
    %238 = arith.mulf %237, %237 : vector<8x32xf32>
    %cst_96 = arith.constant dense<0.000000e+00> : vector<8xf32>
    %239 = vector.multi_reduction <add>, %238, %cst_96 [1] : vector<8x32xf32> to vector<8xf32>
    %240 = vector.shape_cast %239 : vector<8xf32> to vector<8x1xf32>
    %cst_97 = arith.constant 3.200000e+01 : f32
    %241 = vector.broadcast %cst_97 : f32 to vector<8x1xf32>
    %242 = arith.divf %240, %241 : vector<8x1xf32>
    %243 = vector.broadcast %235 : vector<8x1xf32> to vector<8x32xf32>
    %244 = arith.subf %229, %243 : vector<8x32xf32>
    %cst_98 = arith.constant 9.99999974E-6 : f32
    %245 = vector.broadcast %cst_98 : f32 to vector<8x1xf32>
    %246 = arith.addf %242, %245 : vector<8x1xf32>
    %247 = math.rsqrt %246 : vector<8x1xf32>
    %248 = vector.broadcast %247 : vector<8x1xf32> to vector<8x32xf32>
    %249 = arith.mulf %244, %248 : vector<8x32xf32>
    %250 = vector.broadcast %230 : vector<1x32xf32> to vector<8x32xf32>
    %251 = arith.mulf %249, %250 : vector<8x32xf32>
    %252 = vector.broadcast %231 : vector<1x32xf32> to vector<8x32xf32>
    %253 = arith.addf %251, %252 : vector<8x32xf32>
    %c0_99 = arith.constant 0 : index
    %c0_100 = arith.constant 0 : index
    %254 = vector.load %arg13[%c0_99, %c0_100] : memref<64x32xf32, #tpu.memory_space<vmem>>, vector<64x32xf32>
    %cst_101 = arith.constant dense<0.000000e+00> : vector<8x64xf32>
    %255 = tpu.matmul %253, %254, %cst_101 {dimension_numbers = #tpu.dot_dimension_numbers<[1], [1], [0], [0], [0, 0, 1, 0], [], []>} : vector<8x32xf32>, vector<64x32xf32>, vector<8x64xf32> -> vector<8x64xf32>
    %c0_102 = arith.constant 0 : index
    %c0_103 = arith.constant 0 : index
    %256 = vector.load %arg14[%c0_102, %c0_103] : memref<1x64xf32, #tpu.memory_space<vmem>>, vector<1x64xf32>
    %257 = vector.broadcast %256 : vector<1x64xf32> to vector<8x64xf32>
    %258 = arith.addf %255, %257 : vector<8x64xf32>
    %cst_104 = arith.constant 0.000000e+00 : f32
    %259 = vector.broadcast %cst_104 : f32 to vector<8x64xf32>
    %260 = arith.maximumf %258, %259 : vector<8x64xf32>
    %c0_105 = arith.constant 0 : index
    %c0_106 = arith.constant 0 : index
    %261 = vector.load %arg15[%c0_105, %c0_106] : memref<32x64xf32, #tpu.memory_space<vmem>>, vector<32x64xf32>
    %cst_107 = arith.constant dense<0.000000e+00> : vector<8x32xf32>
    %262 = tpu.matmul %260, %261, %cst_107 {dimension_numbers = #tpu.dot_dimension_numbers<[1], [1], [0], [0], [0, 0, 1, 0], [], []>} : vector<8x64xf32>, vector<32x64xf32>, vector<8x32xf32> -> vector<8x32xf32>
    %c0_108 = arith.constant 0 : index
    %c0_109 = arith.constant 0 : index
    %263 = vector.load %arg16[%c0_108, %c0_109] : memref<1x32xf32, #tpu.memory_space<vmem>>, vector<1x32xf32>
    %264 = vector.broadcast %263 : vector<1x32xf32> to vector<8x32xf32>
    %265 = arith.addf %262, %264 : vector<8x32xf32>
    %266 = arith.addf %253, %265 : vector<8x32xf32>
    %c0_110 = arith.constant 0 : index
    %c0_111 = arith.constant 0 : index
    %267 = vector.load %arg21[%c0_110, %c0_111] : memref<1x32xf32, #tpu.memory_space<vmem>>, vector<1x32xf32>
    %c0_112 = arith.constant 0 : index
    %c0_113 = arith.constant 0 : index
    %268 = vector.load %arg22[%c0_112, %c0_113] : memref<1x32xf32, #tpu.memory_space<vmem>>, vector<1x32xf32>
    %cst_114 = arith.constant dense<0.000000e+00> : vector<8xf32>
    %269 = vector.multi_reduction <add>, %266, %cst_114 [1] : vector<8x32xf32> to vector<8xf32>
    %270 = vector.shape_cast %269 : vector<8xf32> to vector<8x1xf32>
    %cst_115 = arith.constant 3.200000e+01 : f32
    %271 = vector.broadcast %cst_115 : f32 to vector<8x1xf32>
    %272 = arith.divf %270, %271 : vector<8x1xf32>
    %273 = vector.broadcast %272 : vector<8x1xf32> to vector<8x32xf32>
    %274 = arith.subf %266, %273 : vector<8x32xf32>
    %275 = arith.mulf %274, %274 : vector<8x32xf32>
    %cst_116 = arith.constant dense<0.000000e+00> : vector<8xf32>
    %276 = vector.multi_reduction <add>, %275, %cst_116 [1] : vector<8x32xf32> to vector<8xf32>
    %277 = vector.shape_cast %276 : vector<8xf32> to vector<8x1xf32>
    %cst_117 = arith.constant 3.200000e+01 : f32
    %278 = vector.broadcast %cst_117 : f32 to vector<8x1xf32>
    %279 = arith.divf %277, %278 : vector<8x1xf32>
    %280 = vector.broadcast %272 : vector<8x1xf32> to vector<8x32xf32>
    %281 = arith.subf %266, %280 : vector<8x32xf32>
    %cst_118 = arith.constant 9.99999974E-6 : f32
    %282 = vector.broadcast %cst_118 : f32 to vector<8x1xf32>
    %283 = arith.addf %279, %282 : vector<8x1xf32>
    %284 = math.rsqrt %283 : vector<8x1xf32>
    %285 = vector.broadcast %284 : vector<8x1xf32> to vector<8x32xf32>
    %286 = arith.mulf %281, %285 : vector<8x32xf32>
    %287 = vector.broadcast %267 : vector<1x32xf32> to vector<8x32xf32>
    %288 = arith.mulf %286, %287 : vector<8x32xf32>
    %289 = vector.broadcast %268 : vector<1x32xf32> to vector<8x32xf32>
    %290 = arith.addf %288, %289 : vector<8x32xf32>
    %c0_119 = arith.constant 0 : index
    %c0_120 = arith.constant 0 : index
    %c0_121 = arith.constant 0 : index
    %291 = vector.load %arg23[%c0_119, %c0_120, %c0_121] : memref<1x8x32xf32, #tpu.memory_space<vmem>>, vector<1x8x32xf32>
    %292 = vector.shape_cast %291 : vector<1x8x32xf32> to vector<8x32xf32>
    %293 = vector.shape_cast %290 : vector<8x32xf32> to vector<1x8x32xf32>
    tpu.vector_store %arg23[%c0_119, %c0_120, %c0_121], %293 {strides = array<i32>} : memref<1x8x32xf32, #tpu.memory_space<vmem>>, vector<1x8x32xf32>,
    return
  }
  func.func @transform_0(%arg0: i32) -> (i32, i32, i32) {
    %c0_i32 = arith.constant 0 : i32
    %c0_i32_0 = arith.constant 0 : i32
    %c0_i32_1 = arith.constant 0 : i32
    return %arg0, %c0_i32, %c0_i32_0 : i32, i32, i32
  }
  func.func @transform_1(%arg0: i32) -> (i32, i32, i32) {
    %c0_i32 = arith.constant 0 : i32
    %c0_i32_0 = arith.constant 0 : i32
    %c0_i32_1 = arith.constant 0 : i32
    return %arg0, %c0_i32, %c0_i32_0 : i32, i32, i32
  }
  func.func @transform_2(%arg0: i32) -> (i32, i32, i32) {
    %c0_i32 = arith.constant 0 : i32
    %c0_i32_0 = arith.constant 0 : i32
    %c0_i32_1 = arith.constant 0 : i32
    return %arg0, %c0_i32, %c0_i32_0 : i32, i32, i32
  }
  func.func @transform_3(%arg0: i32) -> (i32, i32, i32) {
    %c0_i32 = arith.constant 0 : i32
    %c0_i32_0 = arith.constant 0 : i32
    %c0_i32_1 = arith.constant 0 : i32
    return %arg0, %c0_i32, %c0_i32_0 : i32, i32, i32
  }
  func.func @transform_4(%arg0: i32) -> (i32, i32) {
    %c0_i32 = arith.constant 0 : i32
    %c0_i32_0 = arith.constant 0 : i32
    %c0_i32_1 = arith.constant 0 : i32
    return %c0_i32, %c0_i32_0 : i32, i32
  }
  func.func @transform_5(%arg0: i32) -> (i32, i32) {
    %c0_i32 = arith.constant 0 : i32
    %c0_i32_0 = arith.constant 0 : i32
    %c0_i32_1 = arith.constant 0 : i32
    return %c0_i32, %c0_i32_0 : i32, i32
  }
  func.func @transform_6(%arg0: i32) -> (i32, i32) {
    %c0_i32 = arith.constant 0 : i32
    %c0_i32_0 = arith.constant 0 : i32
    %c0_i32_1 = arith.constant 0 : i32
    return %c0_i32, %c0_i32_0 : i32, i32
  }
  func.func @transform_7(%arg0: i32) -> (i32, i32) {
    %c0_i32 = arith.constant 0 : i32
    %c0_i32_0 = arith.constant 0 : i32
    %c0_i32_1 = arith.constant 0 : i32
    return %c0_i32, %c0_i32_0 : i32, i32
  }
  func.func @transform_8(%arg0: i32) -> (i32, i32) {
    %c0_i32 = arith.constant 0 : i32
    %c0_i32_0 = arith.constant 0 : i32
    %c0_i32_1 = arith.constant 0 : i32
    return %c0_i32, %c0_i32_0 : i32, i32
  }
  func.func @transform_9(%arg0: i32) -> (i32, i32) {
    %c0_i32 = arith.constant 0 : i32
    %c0_i32_0 = arith.constant 0 : i32
    %c0_i32_1 = arith.constant 0 : i32
    return %c0_i32, %c0_i32_0 : i32, i32
  }
  func.func @transform_10(%arg0: i32) -> (i32, i32) {
    %c0_i32 = arith.constant 0 : i32
    %c0_i32_0 = arith.constant 0 : i32
    %c0_i32_1 = arith.constant 0 : i32
    return %c0_i32, %c0_i32_0 : i32, i32
  }
  func.func @transform_11(%arg0: i32) -> (i32, i32) {
    %c0_i32 = arith.constant 0 : i32
    %c0_i32_0 = arith.constant 0 : i32
    %c0_i32_1 = arith.constant 0 : i32
    return %c0_i32, %c0_i32_0 : i32, i32
  }
  func.func @transform_12(%arg0: i32) -> (i32, i32) {
    %c0_i32 = arith.constant 0 : i32
    %c0_i32_0 = arith.constant 0 : i32
    %c0_i32_1 = arith.constant 0 : i32
    return %c0_i32, %c0_i32_0 : i32, i32
  }
  func.func @transform_13(%arg0: i32) -> (i32, i32) {
    %c0_i32 = arith.constant 0 : i32
    %c0_i32_0 = arith.constant 0 : i32
    %c0_i32_1 = arith.constant 0 : i32
    return %c0_i32, %c0_i32_0 : i32, i32
  }
  func.func @transform_14(%arg0: i32) -> (i32, i32) {
    %c0_i32 = arith.constant 0 : i32
    %c0_i32_0 = arith.constant 0 : i32
    %c0_i32_1 = arith.constant 0 : i32
    return %c0_i32, %c0_i32_0 : i32, i32
  }
  func.func @transform_15(%arg0: i32) -> (i32, i32) {
    %c0_i32 = arith.constant 0 : i32
    %c0_i32_0 = arith.constant 0 : i32
    %c0_i32_1 = arith.constant 0 : i32
    return %c0_i32, %c0_i32_0 : i32, i32
  }
  func.func @transform_16(%arg0: i32) -> (i32, i32) {
    %c0_i32 = arith.constant 0 : i32
    %c0_i32_0 = arith.constant 0 : i32
    %c0_i32_1 = arith.constant 0 : i32
    return %c0_i32, %c0_i32_0 : i32, i32
  }
  func.func @transform_17(%arg0: i32) -> (i32, i32) {
    %c0_i32 = arith.constant 0 : i32
    %c0_i32_0 = arith.constant 0 : i32
    %c0_i32_1 = arith.constant 0 : i32
    return %c0_i32, %c0_i32_0 : i32, i32
  }
  func.func @transform_18(%arg0: i32) -> (i32, i32) {
    %c0_i32 = arith.constant 0 : i32
    %c0_i32_0 = arith.constant 0 : i32
    %c0_i32_1 = arith.constant 0 : i32
    return %c0_i32, %c0_i32_0 : i32, i32
  }
  func.func @transform_19(%arg0: i32) -> (i32, i32) {
    %c0_i32 = arith.constant 0 : i32
    %c0_i32_0 = arith.constant 0 : i32
    %c0_i32_1 = arith.constant 0 : i32
    return %c0_i32, %c0_i32_0 : i32, i32
  }
  func.func @transform_20(%arg0: i32) -> (i32, i32) {
    %c0_i32 = arith.constant 0 : i32
    %c0_i32_0 = arith.constant 0 : i32
    %c0_i32_1 = arith.constant 0 : i32
    return %c0_i32, %c0_i32_0 : i32, i32
  }
  func.func @transform_21(%arg0: i32) -> (i32, i32) {
    %c0_i32 = arith.constant 0 : i32
    %c0_i32_0 = arith.constant 0 : i32
    %c0_i32_1 = arith.constant 0 : i32
    return %c0_i32, %c0_i32_0 : i32, i32
  }
  func.func @transform_22(%arg0: i32) -> (i32, i32, i32) {
    %c0_i32 = arith.constant 0 : i32
    %c0_i32_0 = arith.constant 0 : i32
    %c0_i32_1 = arith.constant 0 : i32
    return %arg0, %c0_i32, %c0_i32_0 : i32, i32, i32
  }
}

</mosaic_0001>

<bundles_post_ra>
// kernel: tpu_custom_call.1
= control target key start
LH: loop header
LB: loop body
LE: loop exit
PB: predicated region body
PF: predicated region fallthrough
CT: control target
= control target key end

     0   :  { %s5288_s0 = inlined_call_operand.vmem [shape: f32[2,8,32], index: 0, kind: input, shape index: {}]   ;;  %s5289_s1 = inlined_call_operand.vmem [shape: f32[2,16,32], index: 1, kind: input, shape index: {}]   ;;  %s5290_s2 = inlined_call_operand.vmem [shape: f32[2,8,32], index: 2, kind: input, shape index: {}]   ;;  %s5291_s3 = inlined_call_operand.vmem [shape: f32[2,16,32], index: 3, kind: input, shape index: {}]   ;;  %s5292_s4 = inlined_call_operand.vmem [shape: f32[96,32], index: 4, kind: input, shape index: {}]   ;;  %s5293_s5 = inlined_call_operand.vmem [shape: f32[1,96], index: 5, kind: input, shape index: {}]   ;;  %s5294_s6 = inlined_call_operand.vmem [shape: f32[32,32], index: 6, kind: input, shape index: {}]   ;;  %s5295_s7 = inlined_call_operand.vmem [shape: f32[1,32], index: 7, kind: input, shape index: {}]   ;;  %s5296_s8 = inlined_call_operand.vmem [shape: f32[96,32], index: 8, kind: input, shape index: {}]   ;;  %s5297_s9 = inlined_call_operand.vmem [shape: f32[1,96], index: 9, kind: input, shape index: {}]   ;;  %s5298_s10 = inlined_call_operand.vmem [shape: f32[32,32], index: 10, kind: input, shape index: {}]   ;;  %s5299_s11 = inlined_call_operand.vmem [shape: f32[1,32], index: 11, kind: input, shape index: {}]   ;;  %s5300_s12 = inlined_call_operand.vmem [shape: f32[64,32], index: 12, kind: input, shape index: {}]   ;;  %s5301_s13 = inlined_call_operand.vmem [shape: f32[1,64], index: 13, kind: input, shape index: {}]   ;;  %s5302_s14 = inlined_call_operand.vmem [shape: f32[32,64], index: 14, kind: input, shape index: {}]   ;;  %s5303_s15 = inlined_call_operand.vmem [shape: f32[1,32], index: 15, kind: input, shape index: {}]   ;;  %s5304_s16 = inlined_call_operand.vmem [shape: f32[1,32], index: 16, kind: input, shape index: {}]   ;;  %s5305_s17 = inlined_call_operand.vmem [shape: f32[1,32], index: 17, kind: input, shape index: {}]   ;;  %s5306_s18 = inlined_call_operand.vmem [shape: f32[1,32], index: 18, kind: input, shape index: {}]   ;;  %s5307_s19 = inlined_call_operand.vmem [shape: f32[1,32], index: 19, kind: input, shape index: {}]   ;;  %s5308_s20 = inlined_call_operand.vmem [shape: f32[1,32], index: 20, kind: input, shape index: {}]   ;;  %s5309_s21 = inlined_call_operand.vmem [shape: f32[1,32], index: 21, kind: input, shape index: {}]   ;;  %s5310_s22 = inlined_call_operand.hbm [shape: f32[2,8,32], index: 22, kind: output, shape index: {}]  }
   0x1   :  { %5328 = sst [smem:[#allocation11_spill]] %s5288_s0 }
   0x2   :  { %5329 = sst [smem:[#allocation12_spill]] %s5289_s1 }
   0x3   :  { %5330 = sst [smem:[#allocation13_spill]] %s5290_s2 }
   0x4   :  { %5331 = sst [smem:[#allocation14_spill]] %s5291_s3 }
   0x5   :  { %5332 = sst [smem:[#allocation15_spill]] %s5292_s4 }
   0x6   :  { %5333 = sst [smem:[#allocation16_spill]] %s5293_s5 }
   0x7   :  { %5334 = sst [smem:[#allocation17_spill]] %s5294_s6 }
   0x8   :  { %5335 = sst [smem:[#allocation18_spill]] %s5295_s7 }
   0x9   :  { %5336 = sst [smem:[#allocation19_spill]] %s5296_s8 }
   0xa   :  { %5337 = sst [smem:[#allocation20_spill]] %s5297_s9 }
   0xb   :  { %5338 = sst [smem:[#allocation21_spill]] %s5308_s20 }
   0xc   :  { %5339 = sst [smem:[#allocation22_spill]] %s5309_s21 }
   0xd   :  { %5340 = sst [smem:[#allocation23_spill]] %s5310_s22 }
   0xe   :  { %27 = vsyncpa [#allocation3], 0 }
   0xf   :  { %29 = vsyncpa [#allocation3 + $0x1], 0  ;;  %s4557_s3 = smov 0   ;;  %s4559_s28 = smov 0  }
  0x10   :  { %s4561_s29 = smov 0   ;;  %s4563_s30 = smov 0  }
  0x11 LB: > { %5341 = sst [smem:[#allocation5_spill]] %s4417_s3  ;;  %s4578_s4 = sadd.s32 4294967295, %s4429_s30   ;;  %s4429_s30 = sphi %s4563_s30, %s5370_s30   ;;  %s4425_s29 = sphi %s4561_s29, %s5372_s29   ;;  %s4421_s28 = sphi %s4559_s28, %s5374_s28   ;;  %s4417_s3 = sphi %s4557_s3, %s5373_s3  }
  0x12   : > { %5342 = sst [smem:[#allocation6_spill]] %s4425_s29  ;;  %s3738_s0 = sadd.s32 4294967294, %s4429_s30  }
  0x13   : > { %5343 = sst [smem:[#allocation7_spill]] %s4429_s30  ;;  %s4582_s23 = sadd.s32 1, %s4429_s30  }
  0x14   : > { %5344 = sst [smem:[#allocation8_spill]] %s4582_s23  ;;  %s524_s1 = sadd.s32 1, %s4425_s29 }
  0x15   : > { %s521_s5 = ssub.s32 %s4429_s30, %s4582_s23  ;;  %p534_p0 = scmp.ne.s32.totalorder %s4425_s29, %s4421_s28 }
  0x16   : > { %p522_p1 = scmp.eq.s32.totalorder %s521_s5, 0  ;;  %p535_p2 = scmp.eq.s32.totalorder %s4578_s4, 1 }
  0x17   : > { %p540_p3 = scmp.ne.s32.totalorder %s4421_s28, %s4417_s3  ;;  %p541_p4 = scmp.eq.s32.totalorder %s3738_s0, 1 }
  0x18   : > { %s4593_s24 = scalar_select %p522_p1, %s4425_s29, %s524_s1  }
  0x19   : > { %p4595_p5 = por %p535_p2, %p534_p0  ;;  %p4599_p6 = por %p541_p4, %p540_p3 }
  0x1a   : > { %5345 = sst [smem:[#allocation9_spill]] %s4593_s24  ;;  %p3741_p7 = scmp.ge.s32.totalorder %s4429_s30, 1 }
  0x1b   : > { %s5347_s25 = scalar_select %p4599_p6, 1, 0 }
  0x1c   : > { %p643_p8 = scmp.lt.s32.totalorder %s4429_s30, 3 }
  0x1d   : > { %5348 = sst [smem:[#allocation10_spill]] %s5347_s25 }
  0x1e   : > { %p644_p9 = pnand %p3741_p7, %p643_p8 }
  0x1f   : > { %s5349_s27 = sld [smem:[#allocation15_spill]] (!%p644_p9)  ;;  %s5313_s24 = smov (!%p644_p9), 64  }
  0x20   : > { %647 = sbr.rel (%p644_p9) target bundleno = 6266 (0x187a), region = 108  ;;  %s5350_s5 = sld [smem:[#allocation16_spill]] (!%p644_p9) }
  0x21   : > { %p718_p10 = scmp.lt.s32.totalorder (!%p644_p9), %s4578_s4, 1  ;;  %s5351_s25 = sld [smem:[#allocation11_spill]] (!%p644_p9) }
  0x22   : > { %s5352_s21 = sld [smem:[#allocation13_spill]] (!%p644_p9)  ;;  %s4434_s26 = smov (!%p644_p9), 88  }
  0x23   : > { %s5325_s2 = smov (!%p644_p9), 120   ;;  %s5321_s0 = smov (!%p644_p9), 104  }
  0x24   : > { %s4440_s1 = smov (!%p644_p9), 72   ;;  %s5354_s7 = sld [smem:[#allocation18_spill]] (!%p644_p9) }
  0x25   : > { %v750_v0 = vld [vmem:[%s5349_s27 + $0x38] sm:$0xff]  ;;  %vm767_vm0 = vcmask 261120   ;;  %v4431_v1 = vmov 0.0   ;;  %vm4432_vm1 = vmmov 0   ;;  %v749_v3 = vld [vmem:[%s5349_s27 + $0x30] sm:$0xff]  ;;  %v748_v4 = vld [vmem:[%s5349_s27 + $0x28] sm:$0xff] }
  0x26   : > { %4005 = vmatprep.subr.mxu0 %v4431_v1  ;;  %4021 = vmatprep.mubr.msk.f32.mxu0 %vm4432_vm1, %v4431_v1  ;;  %v3749_v2 = vld [vmem:[%s5350_s5] ss:$0 sm:$0xff]  ;;  %v746_v6 = vld [vmem:[%s5349_s27 + $0x18] sm:$0xff]  ;;  %s4640_s29 = scalar_select %p718_p10, %s4578_s4, 1  ;;  %v745_v7 = vld [vmem:[%s5349_s27 + $0x10] sm:$0xff]  ;;  %vm956_vm2 = vcmask 64512  }
  0x27   : > { %4006 = vmatpush3.xpose.msk.msra.mxu0 %vm767_vm0, %v750_v0  ;;  %4024 = vmatprep.subr.mxu1 %v4431_v1  ;;  %v747_v5 = vld [vmem:[%s5349_s27 + $0x20] sm:$0xff]  ;;  %v744_v8 = vld [vmem:[%s5349_s27 + $0x8] sm:$0xff]  ;;  %v754_v13 = vld [vmem:[%s5349_s27 + $0x58] sm:$0xff]  ;;  %s5355_s8 = sld [smem:[#allocation19_spill]]  ;;  %vm2391_vm3 = vcmask 130048   ;;  %vm3512_vm4 = vcmask 523264  }
  0x28   : > { %4007 = vmatprep.subr.mxu0 %v4431_v1  ;;  %865 = vrot.lane.b32.xlu1 %v3749_v2, %s5313_s24  ;;  %s3743_s5 = sshll.u32 %s4640_s29, 3  ;;  %v743_v11 = vld [vmem:[%s5349_s27] sm:$0xff]  ;;  %v753_v14 = vld [vmem:[%s5349_s27 + $0x50] sm:$0xff]  ;;  %v752_v15 = vld [vmem:[%s5349_s27 + $0x48] sm:$0xff]  ;;  %s5327_s24 = smov 96  }
  0x29   : > { %4032 = vmatprep.mubr.msk.f32.mxu1 %vm4432_vm1, %v4431_v1  ;;  %s721_s3 = scalar_lea.vmem %s5351_s25, %s3743_s5  ;;  %s730_s20 = scalar_lea.vmem %s5352_s21, %s3743_s5  ;;  %4025 = vmatpush3.xpose.msk.msra.mxu1 %vm767_vm0, %v754_v13  ;;  %v751_v16 = vld [vmem:[%s5349_s27 + $0x40] sm:$0xff] }
  0x2a   : > { %v4660_v9 = vld [vmem:[%s721_s3] sm:$0xff]  ;;  %4026 = vmatprep.subr.mxu1 %v4431_v1  ;;  %s4437_s5 = smov 80   ;;  %s3878_s21 = sshll.u32 %s4640_s29, 4 }
  0x2b   : > { %4008 = vmatpush3.xpose.msk.msra.mxu0 %vm767_vm0, %v749_v3  ;;  %v4662_v10 = vld [vmem:[%s730_s20] sm:$0xff]  ;;  %s5353_s20 = sld [smem:[#allocation17_spill]]  ;;  %s5359_s3 = smov 96  }
  0x2c   : > { %4009 = vmatprep.subr.mxu0 %v4431_v1  ;;  %v742_v12 = vadd.f32 %v4662_v10, %v4660_v9  ;;  %s5358_s9 = sld [smem:[#allocation20_spill]]  ;;  %s715_s25 = sand.u32 1, %s4421_s28  }
  0x2d   : > { %4027 = vmatpush3.xpose.msk.msra.mxu1 %vm767_vm0, %v753_v14  ;;  %s5366_s23 = sld [smem:[#allocation23_spill]] }
  0x2e   : > { %4028 = vmatprep.subr.mxu1 %v4431_v1 }
  0x2f   : > { %4010 = vmatpush3.xpose.msk.msra.mxu0 %vm767_vm0, %v748_v4 }
  0x30   : > { %4011 = vmatprep.subr.mxu0 %v4431_v1 }
  0x31   : > { %4029 = vmatpush3.xpose.msk.msra.mxu1 %vm767_vm0, %v752_v15  ;;  %v4733_v50 = vld [vmem:[%s5353_s20 + $0x18] sm:$0xff]  ;;  %v4740_v51 = vld [vmem:[%s5353_s20 + $0x10] sm:$0xff]  ;;  %v4747_v52 = vld [vmem:[%s5353_s20] sm:$0xff] }
  0x32   : > { %4030 = vmatprep.subr.mxu1 %v4431_v1  ;;  %v4752_v53 = vld [vmem:[%s5353_s20 + $0x8] sm:$0xff] }
  0x33   : > { %4012 = vmatpush3.xpose.msk.msra.mxu0 %vm767_vm0, %v747_v5 }
  0x34   : > { %4013 = vmatprep.subr.mxu0 %v4431_v1 }
  0x35   : > { %4031 = vmatpush3.xpose.msk.msra.mxu1 %vm767_vm0, %v751_v16 }
  0x36   : > { %4035 = vmatprep.subr.mxu1 %v4431_v1 }
  0x37   : > { %4014 = vmatpush3.xpose.msk.msra.mxu0 %vm767_vm0, %v746_v6 }
  0x38   : > { %4015 = vmatprep.subr.mxu0 %v4431_v1  ;;  %4033 = vmatmul.mubr.msk.f32.vlgmr.msra.gmra.mxu1 %vm767_vm0, %v4660_v9 }
  0x39   : > { %4037 = vmatprep.mubr.msk.f32.mxu1 %vm4432_vm1, %v4431_v1 }
  0x3b   : > { %4016 = vmatpush3.xpose.msk.msra.mxu0 %vm767_vm0, %v745_v7 }
  0x3c   : > { %4017 = vmatprep.subr.mxu0 %v4431_v1 }
  0x3f   : > { %4018 = vmatpush3.xpose.msk.msra.mxu0 %vm767_vm0, %v744_v8 }
  0x40   : > { %4019 = vmatprep.subr.mxu0 %v4431_v1 }
  0x43   : > { %4020 = vmatpush3.xpose.msk.msra.mxu0 %vm767_vm0, %v743_v11 }
  0x44   : > { %4055 = vmatprep.subr.mxu0 %v4431_v1 }
  0x46   : > { %4022 = vmatmul.mubr.msk.f32.vlgmr.msra.gmra.mxu0 %vm767_vm0, %v742_v12 }
  0x47   : > { %4063 = vmatprep.mubr.msk.f32.mxu0 %vm4432_vm1, %v4431_v1 }
  0x9a   : > { %v866_v22 = vpop.permute.xlu1 %865 }
  0xf8   : > { %v949_v20 = vpop.f32.mrf.mxu1 }
  0xf9   : > { %v4705_v24 = vadd.f32 %v949_v20, %v866_v22 }
  0xfa   : > { %v4034_v21 = vpop.f32.mrf.mxu1 }
 0x106   : > { %v861_v17 = vpop.f32.mrf.mxu0 }
 0x107   : > { %v4699_v18 = vadd.f32 %v3749_v2, %v861_v17 }
 0x108   : > { %v4023_v19 = vpop.f32.mrf.mxu0 }
 0x109   : > { %1118 = vrot.lane.b32.xlu1 %v4699_v18, %s4434_s26  ;;  %954 = vrot.lane.b32.xlu0 %v4699_v18, %s5327_s24  ;;  %s5323_s26 = smov 112   ;;  %s4441_s24 = smov [#allocation2]  }
 0x17b   : > { %v955_v23 = vpop.permute.xlu0 %954  ;;  %v1119_v34 = vpop.permute.xlu1 %1118 }
 0x17c   : > { %4036 = vmatpush3.xpose.msk.msra.mxu1 %vm956_vm2, %v955_v23 }
 0x17d   : > { %4040 = vmatprep.subr.mxu1 %v4431_v1 }
 0x17f   : > { %4038 = vmatmul.mubr.msk.f32.vlgmr.msra.gmra.mxu1 %vm956_vm2, %v4699_v18 }
 0x180   : > { %4041 = vmatpush3.msra.mxu1 %v4705_v24  ;;  %4042 = vmatprep.mubr.msk.f32.mxu1 %vm4432_vm1, %v4431_v1 }
 0x181   : > { %4045 = vmatprep.subr.mxu1 %v4431_v1 }
 0x23f   : > { %v1027_v25 = vpop.f32.mrf.mxu1 }
 0x240   : > { %v1031_v26 = vmul.f32 0.35355338, %v1027_v25 }
 0x241   : > { %v4039_v27 = vpop.f32.mrf.mxu1 }
 0x242   : > { %v1032_v28 = vsel %vm956_vm2, %v1031_v26, -inf }
 0x243   : > { %1033 = vmax.xlane.f32.xlu0 %v1032_v28 }
 0x2cc   : > { %v1034_v29 = vpop.xlane.xlu0 %1033 }
 0x2cd   : > { %v1035_v30 = vsub.f32 %v1031_v26, %v1034_v29 }
 0x2cf   : > { %v1036_v31 = vmul.f32 1.442695, %v1035_v30 }
 0x2d1   : > { %4331 = vpow2.f32 %v1036_v31 }
 0x2de   : > { %v4332_v32 = vpop.eup %4331 }
 0x2df   : > { %v1038_v33 = vsel %vm956_vm2, %v4332_v32, 0.0 }
 0x2e0   : > { %1039 = vadd.xlane.f32.xlu1 %v1038_v33 }
 0x2f1   : > { %1116 = vrot.lane.b32.xlu1 %v4699_v18, %s5325_s2 }
 0x369   : > { %v1040_v35 = vpop.xlane.xlu1 %1039 }
 0x36a   : > { %4333 = vrcp.f32 %v1040_v35 }
 0x36d   : > { %v1117_v38 = vpop.permute.xlu1 %1116 }
 0x377   : > { %v4334_v36 = vpop.eup %4333 }
 0x378   : > { %v1042_v37 = vmul.f32 %v4334_v36, %v4332_v32 }
 0x37a   : > { %4043 = vmatmul.mubr.msk.f32.vlgmr.msra.gmra.mxu1 %vm956_vm2, %v1042_v37 }
 0x37b   : > { %4046 = vmatpush3.xpose.msk.msra.mxu1 %vm956_vm2, %v1119_v34  ;;  %4047 = vmatprep.mubr.msk.f32.mxu1 %vm4432_vm1, %v4431_v1 }
 0x37c   : > { %4050 = vmatprep.subr.mxu1 %v4431_v1 }
 0x37e   : > { %4048 = vmatmul.mubr.msk.f32.vlgmr.msra.gmra.mxu1 %vm956_vm2, %v1117_v38 }
 0x37f   : > { %4052 = vmatprep.mubr.msk.f32.mxu1 %vm4432_vm1, %v4431_v1 }
 0x43a   : > { %v1112_v39 = vpop.f32.mrf.mxu1 }
 0x43c   : > { %v4044_v40 = vpop.f32.mrf.mxu1 }
 0x43e   : > { %v1190_v41 = vpop.f32.mrf.mxu1 }
 0x43f   : > { %v1194_v42 = vmul.f32 0.35355338, %v1190_v41 }
 0x440   : > { %v4049_v43 = vpop.f32.mrf.mxu1 }
 0x441   : > { %v1195_v44 = vsel %vm956_vm2, %v1194_v42, -inf }
 0x442   : > { %1196 = vmax.xlane.f32.xlu1 %v1195_v44 }
 0x453   : > { %1289 = vrot.lane.b32.xlu1 %v4752_v53, %s5325_s2 }
 0x4cb   : > { %v1197_v45 = vpop.xlane.xlu1 %1196 }
 0x4cc   : > { %v1198_v46 = vsub.f32 %v1194_v42, %v1197_v45 }
 0x4ce   : > { %v1199_v47 = vmul.f32 1.442695, %v1198_v46 }
 0x4cf   : > { %v1290_v59 = vpop.permute.xlu1 %1289 }
 0x4d0   : > { %4335 = vpow2.f32 %v1199_v47 }
 0x4dd   : > { %v4336_v48 = vpop.eup %4335 }
 0x4de   : > { %v1201_v49 = vsel %vm956_vm2, %v4336_v48, 0.0 }
 0x4df   : > { %1202 = vadd.xlane.f32.xlu0 %v1201_v49 }
 0x4f5   : > { %1207 = vrot.lane.b32.xlu0 %v4705_v24, %s5325_s2 }
 0x4f9   : > { %1293 = vrot.lane.b32.xlu0 %v4733_v50, %s5325_s2 }
 0x4fd   : > { %1291 = vrot.lane.b32.xlu0 %v4740_v51, %s5325_s2 }
 0x501   : > { %1287 = vrot.lane.b32.xlu0 %v4747_v52, %s5325_s2 }
 0x505   : > { %1459 = vrot.lane.b32.xlu0 %v4699_v18, %s4437_s5  ;;  %s5361_s5 = smov 64  }
 0x509   : > { %1457 = vrot.lane.b32.xlu0 %v4699_v18, %s5323_s26 }
 0x568   : > { %v1203_v54 = vpop.xlane.xlu0 %1202 }
 0x569   : > { %4337 = vrcp.f32 %v1203_v54 }
 0x56c   : > { %v1208_v55 = vpop.permute.xlu0 %1207 }
 0x56d   : > { %4051 = vmatpush3.msra.mxu1 %v1208_v55 }
 0x56e   : > { %4066 = vmatprep.subr.mxu1 %v4431_v1 }
 0x570   : > { %v1294_v56 = vpop.permute.xlu0 %1293 }
 0x571   : > { %4056 = vmatpush3.xpose.msk.msra.mxu0 %vm956_vm2, %v1294_v56 }
 0x572   : > { %4057 = vmatprep.subr.mxu0 %v4431_v1 }
 0x574   : > { %v1292_v57 = vpop.permute.xlu0 %1291 }
 0x575   : > { %4058 = vmatpush3.xpose.msk.msra.mxu0 %vm956_vm2, %v1292_v57 }
 0x576   : > { %v4338_v58 = vpop.eup %4337  ;;  %4059 = vmatprep.subr.mxu0 %v4431_v1 }
 0x577   : > { %v1205_v60 = vmul.f32 %v4338_v58, %v4336_v48 }
 0x578   : > { %v1288_v61 = vpop.permute.xlu0 %1287 }
 0x579   : > { %4053 = vmatmul.mubr.msk.f32.vlgmr.msra.gmra.mxu1 %vm956_vm2, %v1205_v60  ;;  %4060 = vmatpush3.xpose.msk.msra.mxu0 %vm956_vm2, %v1290_v59 }
 0x57a   : > { %4067 = vmatpush3.xpose.msk.msra.mxu1 %vm956_vm2, %v4733_v50  ;;  %4074 = vmatprep.mubr.msk.f32.mxu1 %vm4432_vm1, %v4431_v1 }
 0x57b   : > { %4068 = vmatprep.subr.mxu1 %v4431_v1  ;;  %4061 = vmatprep.subr.mxu0 %v4431_v1 }
 0x57c   : > { %v1460_v62 = vpop.permute.xlu0 %1459 }
 0x57d   : > { %4062 = vmatpush3.xpose.msk.msra.mxu0 %vm956_vm2, %v1288_v61 }
 0x57e   : > { %4069 = vmatpush3.xpose.msk.msra.mxu1 %vm956_vm2, %v4740_v51  ;;  %4077 = vmatprep.subr.mxu0 %v4431_v1 }
 0x57f   : > { %4070 = vmatprep.subr.mxu1 %v4431_v1 }
 0x580   : > { %v1458_v2 = vpop.permute.xlu0 %1457 }
 0x582   : > { %4071 = vmatpush3.xpose.msk.msra.mxu1 %vm956_vm2, %v4752_v53 }
 0x583   : > { %4072 = vmatprep.subr.mxu1 %v4431_v1 }
 0x586   : > { %4073 = vmatpush3.xpose.msk.msra.mxu1 %vm956_vm2, %v4747_v52 }
 0x587   : > { %4082 = vmatprep.subr.mxu1 %v4431_v1 }
 0x589   : > { %4075 = vmatmul.mubr.msk.f32.vlgmr.msra.gmra.mxu1 %vm956_vm2, %v1112_v39 }
 0x58a   : > { %4084 = vmatprep.mubr.msk.f32.mxu1 %vm4432_vm1, %v4431_v1 }
 0x639   : > { %v1279_v63 = vpop.f32.mrf.mxu1 }
 0x63a   : > { %4064 = vmatmul.mubr.msk.f32.vlgmr.msra.gmra.mxu0 %vm956_vm2, %v1279_v63 }
 0x63b   : > { %4078 = vmatpush3.xpose.msk.msra.mxu0 %vm956_vm2, %v1460_v62  ;;  %v4054_v0 = vpop.f32.mrf.mxu1  ;;  %4079 = vmatprep.mubr.msk.f32.mxu0 %vm4432_vm1, %v4431_v1 }
 0x63c   : > { %4087 = vmatprep.subr.mxu0 %v4431_v1 }
 0x63e   : > { %4080 = vmatmul.mubr.msk.f32.vlgmr.msra.gmra.mxu0 %vm956_vm2, %v1458_v2  ;;  %v2017_v2 = vld [vmem:[%s5355_s8 + $0x38] sm:$0xff] }
 0x63f   : > { %4095 = vmatprep.mubr.msk.f32.mxu0 %vm4432_vm1, %v4431_v1 }
 0x649   : > { %v4796_v3 = vpop.f32.mrf.mxu1 }
 0x64b   : > { %v4076_v4 = vpop.f32.mrf.mxu1 }
 0x64c   : > { %v2013_v4 = vld [vmem:[%s5355_s8 + $0x18] sm:$0xff] }
 0x6fa   : > { %v4798_v5 = vpop.f32.mrf.mxu0 }
 0x6fb   : > { %v1454_v48 = vadd.f32 %v4796_v3, %v4798_v5  ;;  %v2015_v3 = vld [vmem:[%s5355_s8 + $0x28] sm:$0xff]  ;;  %v2014_v5 = vld [vmem:[%s5355_s8 + $0x20] sm:$0xff] }
 0x6fc   : > { %v4065_v6 = vpop.f32.mrf.mxu0 }
 0x6fe   : > { %v1531_v7 = vpop.f32.mrf.mxu0 }
 0x6ff   : > { %v1535_v8 = vmul.f32 0.35355338, %v1531_v7 }
 0x700   : > { %v4081_v11 = vpop.f32.mrf.mxu0 }
 0x701   : > { %v1536_v12 = vsel %vm956_vm2, %v1535_v8, -inf }
 0x702   : > { %1537 = vmax.xlane.f32.xlu0 %v1536_v12 }
 0x718   : > { %1547 = vrot.lane.b32.xlu0 %v4705_v24, %s5323_s26 }
 0x71c   : > { %1713 = vrot.lane.b32.xlu0 %v4699_v18, %s5321_s0 }
 0x78b   : > { %v1538_v13 = vpop.xlane.xlu0 %1537 }
 0x78c   : > { %v1539_v14 = vsub.f32 %v1535_v8, %v1538_v13 }
 0x78e   : > { %v1540_v15 = vmul.f32 1.442695, %v1539_v14  ;;  %v2012_v14 = vld [vmem:[%s5355_s8 + $0x10] sm:$0xff] }
 0x78f   : > { %v1548_v16 = vpop.permute.xlu0 %1547 }
 0x790   : > { %4339 = vpow2.f32 %v1540_v15  ;;  %4083 = vmatpush3.msra.mxu1 %v1548_v16  ;;  %v2011_v15 = vld [vmem:[%s5355_s8 + $0x8] sm:$0xff]  ;;  %v2010_v16 = vld [vmem:[%s5355_s8] sm:$0xff] }
 0x791   : > { %4098 = vmatprep.subr.mxu1 %v4431_v1 }
 0x793   : > { %v1714_v25 = vpop.permute.xlu0 %1713 }
 0x79d   : > { %v4340_v17 = vpop.eup %4339 }
 0x79e   : > { %v1542_v19 = vsel %vm956_vm2, %v4340_v17, 0.0 }
 0x79f   : > { %1543 = vadd.xlane.f32.xlu1 %v1542_v19 }
 0x7b0   : > { %1715 = vrot.lane.b32.xlu1 %v4699_v18, %s4440_s1  ;;  %s5357_s1 = sld [smem:[#allocation14_spill]] }
 0x828   : > { %v1544_v20 = vpop.xlane.xlu1 %1543 }
 0x829   : > { %4341 = vrcp.f32 %v1544_v20 }
 0x82c   : > { %v1716_v23 = vpop.permute.xlu1 %1715 }
 0x836   : > { %v4342_v21 = vpop.eup %4341 }
 0x837   : > { %v1546_v22 = vmul.f32 %v4342_v21, %v4340_v17  ;;  %v4924_v17 = vld [vmem:[%s5358_s9] ss:$0 sm:$0xff]  ;;  %s3630_s9 = scalar_lea.sflag [#allocation3], %s715_s25 }
 0x839   : > { %4085 = vmatmul.mubr.msk.f32.vlgmr.msra.gmra.mxu1 %vm956_vm2, %v1546_v22 }
 0x83a   : > { %4099 = vmatpush3.xpose.msk.msra.mxu1 %vm956_vm2, %v1716_v23  ;;  %4100 = vmatprep.mubr.msk.f32.mxu1 %vm4432_vm1, %v4431_v1  ;;  %v3797_v23 = vld [vmem:[%s5304_s16] ss:$0 sm:$0xff] }
 0x83b   : > { %4103 = vmatprep.subr.mxu1 %v4431_v1 }
 0x83d   : > { %4101 = vmatmul.mubr.msk.f32.vlgmr.msra.gmra.mxu1 %vm956_vm2, %v1714_v25 }
 0x83e   : > { %4105 = vmatprep.mubr.msk.f32.mxu1 %vm4432_vm1, %v4431_v1 }
 0x8f9   : > { %v1619_v18 = vpop.f32.mrf.mxu1 }
 0x8fb   : > { %v4086_v26 = vpop.f32.mrf.mxu1 }
 0x8fd   : > { %v1787_v27 = vpop.f32.mrf.mxu1 }
 0x8fe   : > { %v1791_v28 = vmul.f32 0.35355338, %v1787_v27 }
 0x8ff   : > { %v4102_v29 = vpop.f32.mrf.mxu1 }
 0x900   : > { %v1792_v30 = vsel %vm956_vm2, %v1791_v28, -inf }
 0x901   : > { %1793 = vmax.xlane.f32.xlu1 %v1792_v30 }
 0x912   : > { %1629 = vrot.lane.b32.xlu1 %v4733_v50, %s5323_s26 }
 0x916   : > { %1885 = vrot.lane.b32.xlu1 %v4733_v50, %s5321_s0 }
 0x91a   : > { %1883 = vrot.lane.b32.xlu1 %v4740_v51, %s5321_s0 }
 0x91e   : > { %1881 = vrot.lane.b32.xlu1 %v4752_v53, %s5321_s0 }
 0x922   : > { %1879 = vrot.lane.b32.xlu1 %v4747_v52, %s5321_s0 }
 0x98a   : > { %v1794_v31 = vpop.xlane.xlu1 %1793 }
 0x98b   : > { %v1795_v32 = vsub.f32 %v1791_v28, %v1794_v31 }
 0x98d   : > { %v1796_v33 = vmul.f32 1.442695, %v1795_v32 }
 0x98e   : > { %v1630_v36 = vpop.permute.xlu1 %1629 }
 0x98f   : > { %4343 = vpow2.f32 %v1796_v33  ;;  %4088 = vmatpush3.xpose.msk.msra.mxu0 %vm956_vm2, %v1630_v36  ;;  %v2018_v36 = vld [vmem:[%s5355_s8 + $0x40] sm:$0xff] }
 0x990   : > { %4089 = vmatprep.subr.mxu0 %v4431_v1 }
 0x992   : > { %v1886_v40 = vpop.permute.xlu1 %1885 }
 0x996   : > { %v1884_v43 = vpop.permute.xlu1 %1883 }
 0x99a   : > { %v1882_v45 = vpop.permute.xlu1 %1881 }
 0x99c   : > { %v4344_v34 = vpop.eup %4343 }
 0x99d   : > { %v1798_v35 = vsel %vm956_vm2, %v4344_v34, 0.0 }
 0x99e   : > { %1799 = vadd.xlane.f32.xlu0 %v1798_v35  ;;  %v1880_v46 = vpop.permute.xlu1 %1879  ;;  %v2019_v35 = vld [vmem:[%s5355_s8 + $0x48] sm:$0xff] }
 0x9b4   : > { %1803 = vrot.lane.b32.xlu0 %v4705_v24, %s5321_s0  ;;  %s5363_s0 = smov 104  }
 0x9b8   : > { %1627 = vrot.lane.b32.xlu0 %v4740_v51, %s5323_s26 }
 0x9bc   : > { %1625 = vrot.lane.b32.xlu0 %v4752_v53, %s5323_s26  ;;  %v3796_v53 = vld [vmem:[%s5354_s7] ss:$0 sm:$0xff]  ;;  %s735_s7 = scalar_lea.vmem %s5357_s1, %s3878_s21  ;;  %s5360_s1 = smov 120  }
 0x9bd   : > { %v740_v7 = vld [vmem:[%s735_s7] sm:$0xff]  ;;  %v741_v11 = vld [vmem:[%s735_s7 + $0x8] sm:$0xff]  ;;  %s5362_s7 = smov 112  }
 0x9c0   : > { %1623 = vrot.lane.b32.xlu0 %v4747_v52, %s5323_s26  ;;  %s5356_s26 = sld [smem:[#allocation12_spill]] }
 0x9c6   : > { %s726_s2 = scalar_lea.vmem %s5356_s26, %s3878_s21 }
 0x9c7   : > { %v737_v6 = vld [vmem:[%s726_s2] sm:$0xff]  ;;  %v4899_v8 = vld [vmem:[%s726_s2 + $0x8] sm:$0xff] }
 0x9c8   : > { %v2008_v12 = vadd.f32 %v740_v7, %v737_v6  ;;  %v2009_v13 = vadd.f32 %v741_v11, %v4899_v8 }
 0xa27   : > { %v1800_v37 = vpop.xlane.xlu0 %1799 }
 0xa28   : > { %4345 = vrcp.f32 %v1800_v37 }
 0xa2b   : > { %v1804_v38 = vpop.permute.xlu0 %1803 }
 0xa2c   : > { %4104 = vmatpush3.msra.mxu1 %v1804_v38 }
 0xa2d   : > { %4108 = vmatprep.subr.mxu1 %v4431_v1 }
 0xa2f   : > { %v1628_v39 = vpop.permute.xlu0 %1627 }
 0xa30   : > { %4090 = vmatpush3.xpose.msk.msra.mxu0 %vm956_vm2, %v1628_v39 }
 0xa31   : > { %4091 = vmatprep.subr.mxu0 %v4431_v1 }
 0xa33   : > { %v1626_v24 = vpop.permute.xlu0 %1625 }
 0xa34   : > { %4092 = vmatpush3.xpose.msk.msra.mxu0 %vm956_vm2, %v1626_v24 }
 0xa35   : > { %v4346_v41 = vpop.eup %4345  ;;  %4093 = vmatprep.subr.mxu0 %v4431_v1 }
 0xa36   : > { %v1802_v42 = vmul.f32 %v4346_v41, %v4344_v34  ;;  %v2020_v34 = vld [vmem:[%s5355_s8 + $0x50] sm:$0xff] }
 0xa37   : > { %v1624_v44 = vpop.permute.xlu0 %1623 }
 0xa38   : > { %4094 = vmatpush3.xpose.msk.msra.mxu0 %vm956_vm2, %v1624_v44  ;;  %4106 = vmatmul.mubr.msk.f32.vlgmr.msra.gmra.mxu1 %vm956_vm2, %v1802_v42 }
 0xa39   : > { %4109 = vmatpush3.xpose.msk.msra.mxu1 %vm956_vm2, %v1886_v40  ;;  %4116 = vmatprep.mubr.msk.f32.mxu1 %vm4432_vm1, %v4431_v1 }
 0xa3a   : > { %4110 = vmatprep.subr.mxu1 %v4431_v1  ;;  %4119 = vmatprep.subr.mxu0 %v4431_v1 }
 0xa3b   : > { %4096 = vmatmul.mubr.msk.f32.vlgmr.msra.gmra.mxu0 %vm956_vm2, %v1619_v18  ;;  %v3798_v18 = vld [vmem:[%s5305_s17] ss:$0 sm:$0xff] }
 0xa3c   : > { %4127 = vmatprep.mubr.msk.f32.mxu0 %vm4432_vm1, %v4431_v1  ;;  %4120 = vmatpush3.xpose.msk.msra.mxu0 %vm767_vm0, %v2013_v4 }
 0xa3d   : > { %4111 = vmatpush3.xpose.msk.msra.mxu1 %vm956_vm2, %v1884_v43  ;;  %4121 = vmatprep.subr.mxu0 %v4431_v1 }
 0xa3e   : > { %4112 = vmatprep.subr.mxu1 %v4431_v1 }
 0xa40   : > { %4122 = vmatpush3.xpose.msk.msra.mxu0 %vm767_vm0, %v2012_v14 }
 0xa41   : > { %4113 = vmatpush3.xpose.msk.msra.mxu1 %vm956_vm2, %v1882_v45  ;;  %4123 = vmatprep.subr.mxu0 %v4431_v1 }
 0xa42   : > { %4114 = vmatprep.subr.mxu1 %v4431_v1 }
 0xa44   : > { %4124 = vmatpush3.xpose.msk.msra.mxu0 %vm767_vm0, %v2011_v15 }
 0xa45   : > { %4115 = vmatpush3.xpose.msk.msra.mxu1 %vm956_vm2, %v1880_v46  ;;  %4125 = vmatprep.subr.mxu0 %v4431_v1  ;;  %v4999_v46 = vld [vmem:[%s5298_s10 + $0x18] sm:$0xff] }
 0xa46   : > { %4130 = vmatprep.subr.msk.mxu1 %vm767_vm0, %v2017_v2 }
 0xa48   : > { %4126 = vmatpush3.xpose.msk.msra.mxu0 %vm767_vm0, %v2010_v16 }
 0xaf8   : > { %v1875_v47 = vpop.f32.mrf.mxu1 }
 0xaf9   : > { %4117 = vmatmul.mubr.msk.f32.vlgmr.msra.gmra.mxu1 %vm956_vm2, %v1875_v47  ;;  %v5007_v47 = vld [vmem:[%s5298_s10 + $0x10] sm:$0xff] }
 0xafa   : > { %v4107_v49 = vpop.f32.mrf.mxu1  ;;  %4131 = vmatpush3.xpose.msk.msra.mxu1 %vm767_vm0, %v2017_v2  ;;  %4138 = vmatprep.mubr.msk.f32.mxu1 %vm767_vm0, %v2008_v12 }
 0xafb   : > { %v1708_v50 = vpop.f32.mrf.mxu0 }
 0xafc   : > { %v1712_v51 = vadd.f32 %v1708_v50, %v1454_v48 }
 0xafd   : > { %v4097_v52 = vpop.f32.mrf.mxu0 }
 0xbb9   : > { %v1964_v54 = vpop.f32.mrf.mxu1 }
 0xbba   : > { %v1968_v55 = vadd.f32 %v1964_v54, %v1712_v51 }
 0xbbb   : > { %v4118_v56 = vpop.f32.mrf.mxu1 }
 0xbbc   : > { %v1975_v57 = vadd.f32 %v3796_v53, %v1968_v55 }
 0xbbe   : > { %v1976_v58 = vadd.f32 %v1975_v57, %v4660_v9  ;;  %v2016_v9 = vld [vmem:[%s5355_s8 + $0x30] sm:$0xff] }
 0xbbf   : > { %4132 = vmatprep.subr.msk.mxu1 %vm767_vm0, %v2016_v9 }
 0xbc0   : > { %v1979_v59 = vsel %vm767_vm0, %v1976_v58, 0.0  ;;  %4133 = vmatpush3.xpose.msk.msra.mxu1 %vm767_vm0, %v2016_v9 }
 0xbc1   : > { %1980 = vadd.xlane.f32.xlu0 %v1979_v59  ;;  %4134 = vmatprep.subr.msk.mxu1 %vm767_vm0, %v2015_v3 }
 0xbc4   : > { %4135 = vmatpush3.xpose.msk.msra.mxu1 %vm767_vm0, %v2015_v3 }
 0xbc5   : > { %4136 = vmatprep.subr.msk.mxu1 %vm767_vm0, %v2014_v5 }
 0xbc8   : > { %4137 = vmatpush3.xpose.msk.msra.mxu1 %vm767_vm0, %v2014_v5 }
 0xbc9   : > { %4152 = vmatprep.subr.mxu1 %v4431_v1 }
 0xbcb   : > { %4139 = vmatmul.mubr.msk.f32.vlgmr.msra.gmra.mxu1 %vm767_vm0, %v2009_v13 }
 0xbcc   : > { %4156 = vmatprep.mubr.msk.f32.mxu1 %vm4432_vm1, %v4431_v1 }
 0xbd7   : > { %2119 = vrot.lane.b32.xlu0 %v4924_v17, %s5359_s3 }
 0xc4a   : > { %v1981_v60 = vpop.xlane.xlu0 %1980 }
 0xc4b   : > { %v1983_v61 = vmul.f32 0.03125, %v1981_v60  ;;  %v5032_v60 = vld [vmem:[%s5298_s10] sm:$0xff] }
 0xc4d   : > { %v1984_v62 = vsub.f32 %v1976_v58, %v1983_v61 }
 0xc4e   : > { %v2120_v29 = vpop.permute.xlu0 %2119 }
 0xc4f   : > { %v1985_v63 = vmul.f32 %v1984_v62, %v1984_v62 }
 0xc51   : > { %v1986_v0 = vsel %vm767_vm0, %v1985_v63, 0.0  ;;  %v5042_v63 = vld [vmem:[%s5298_s10 + $0x8] sm:$0xff] }
 0xc52   : > { %1987 = vadd.xlane.f32.xlu1 %v1986_v0 }
 0xc8b   : > { %v4140_v30 = vpop.f32.mrf.mxu1 }
 0xc8c   : > { %v4940_v31 = vadd.f32 %v4140_v30, %v2120_v29 }
 0xc8d   : > { %v2206_v32 = vpop.f32.mrf.mxu1 }
 0xc8e   : > { %2480 = vrot.lane.b32.xlu1 %v4940_v31, %s5360_s1  ;;  %4153 = vmatpush3.xpose.msk.msra.mxu1 %vm956_vm2, %v4940_v31  ;;  %v4946_v33 = vadd.f32 %v2206_v32, %v2120_v29 }
 0xc8f   : > { %4154 = vmatprep.subr.mxu1 %v4431_v1 }
 0xc90   : > { %2478 = vrot.lane.b32.xlu0 %v4946_v33, %s5360_s1 }
 0xc92   : > { %4155 = vmatpush3.xpose.msk.msra.mxu1 %vm956_vm2, %v4946_v33 }
 0xc93   : > { %4166 = vmatprep.subr.mxu1 %v4431_v1 }
 0xcdb   : > { %v1988_v19 = vpop.xlane.xlu1 %1987 }
 0xcdc   : > { %v1989_v20 = vmul.f32 0.03125, %v1988_v19 }
 0xcde   : > { %v1990_v21 = vadd.f32 1e-05, %v1989_v20 }
 0xce0   : > { %4347 = vrsqrt.f32 %v1990_v21 }
 0xced   : > { %v4348_v22 = vpop.eup %4347 }
 0xcee   : > { %v1992_v25 = vmul.f32 %v4348_v22, %v1984_v62 }
 0xcf0   : > { %v1999_v26 = vmul.f32 %v3797_v23, %v1992_v25 }
 0xcf2   : > { %v4934_v27 = vadd.f32 %v3798_v18, %v1999_v26 }
 0xcf4   : > { %v2007_v28 = vadd.f32 %v4934_v27, %v4662_v10  ;;  %v2021_v10 = vld [vmem:[%s5355_s8 + $0x58] sm:$0xff] }
 0xcf5   : > { %4141 = vmatprep.subr.msk.mxu0 %vm767_vm0, %v2021_v10 }
 0xcf6   : > { %4128 = vmatmul.mubr.msk.f32.vlgmr.msra.gmra.mxu0 %vm767_vm0, %v2007_v28 }
 0xcf7   : > { %4149 = vmatprep.mubr.msk.f32.mxu0 %vm767_vm0, %v737_v6  ;;  %4142 = vmatpush3.xpose.msk.msra.mxu0 %vm767_vm0, %v2021_v10 }
 0xcf8   : > { %4143 = vmatprep.subr.msk.mxu0 %vm767_vm0, %v2020_v34 }
 0xcfb   : > { %4144 = vmatpush3.xpose.msk.msra.mxu0 %vm767_vm0, %v2020_v34 }
 0xcfc   : > { %4145 = vmatprep.subr.msk.mxu0 %vm767_vm0, %v2019_v35 }
 0xcff   : > { %4146 = vmatpush3.xpose.msk.msra.mxu0 %vm767_vm0, %v2019_v35 }
 0xd00   : > { %v2481_v39 = vpop.permute.xlu1 %2480  ;;  %4147 = vmatprep.subr.msk.mxu0 %vm767_vm0, %v2018_v36 }
 0xd02   : > { %v2479_v24 = vpop.permute.xlu0 %2478 }
 0xd03   : > { %4148 = vmatpush3.xpose.msk.msra.mxu0 %vm767_vm0, %v2018_v36 }
 0xd04   : > { %4159 = vmatprep.subr.mxu0 %v4431_v1 }
 0xd06   : > { %4150 = vmatmul.mubr.msk.f32.vlgmr.msra.gmra.mxu0 %vm767_vm0, %v4899_v8 }
 0xd07   : > { %4163 = vmatprep.mubr.msk.f32.mxu0 %vm4432_vm1, %v4431_v1 }
 0xdb6   : > { %v2115_v37 = vpop.f32.mrf.mxu0 }
 0xdb7   : > { %v4973_v38 = vadd.f32 %v4924_v17, %v2115_v37 }
 0xdb8   : > { %v4129_v40 = vpop.f32.mrf.mxu0 }
 0xdb9   : > { %2476 = vrot.lane.b32.xlu1 %v4973_v38, %s5360_s1  ;;  %4157 = vmatmul.mubr.msk.f32.vlgmr.msra.gmra.mxu1 %vm956_vm2, %v4973_v38 }
 0xdba   : > { %4167 = vmatpush3.xpose.msk.msra.mxu1 %vm956_vm2, %v2481_v39  ;;  %4170 = vmatprep.mubr.msk.f32.mxu1 %vm4432_vm1, %v4431_v1 }
 0xdbb   : > { %4168 = vmatprep.subr.mxu1 %v4431_v1 }
 0xdbe   : > { %4169 = vmatpush3.xpose.msk.msra.mxu1 %vm956_vm2, %v2479_v24 }
 0xdbf   : > { %4191 = vmatprep.subr.mxu1 %v4431_v1 }
 0xdc6   : > { %v4151_v52 = vpop.f32.mrf.mxu0 }
 0xdc8   : > { %v2302_v55 = vpop.f32.mrf.mxu0 }
 0xe2b   : > { %v2477_v41 = vpop.permute.xlu1 %2476 }
 0xe2c   : > { %4171 = vmatmul.mubr.msk.f32.vlgmr.msra.gmra.mxu1 %vm956_vm2, %v2477_v41 }
 0xe2d   : > { %4199 = vmatprep.mubr.msk.f32.mxu1 %vm4432_vm1, %v4431_v1  ;;  %4192 = vmatpush3.xpose.msk.msra.mxu1 %vm956_vm2, %v4999_v46 }
 0xe2e   : > { %4193 = vmatprep.subr.mxu1 %v4431_v1 }
 0xe31   : > { %4194 = vmatpush3.xpose.msk.msra.mxu1 %vm956_vm2, %v5007_v47 }
 0xe32   : > { %4195 = vmatprep.subr.mxu1 %v4431_v1 }
 0xe35   : > { %4196 = vmatpush3.xpose.msk.msra.mxu1 %vm956_vm2, %v5042_v63 }
 0xe36   : > { %4197 = vmatprep.subr.mxu1 %v4431_v1 }
 0xe39   : > { %4198 = vmatpush3.xpose.msk.msra.mxu1 %vm956_vm2, %v5032_v60 }
 0xe3a   : > { %4209 = vmatprep.subr.mxu1 %v4431_v1 }
 0xe79   : > { %v2386_v42 = vpop.f32.mrf.mxu1 }
 0xe7a   : > { %v2390_v43 = vmul.f32 0.35355338, %v2386_v42 }
 0xe7b   : > { %v4158_v44 = vpop.f32.mrf.mxu1 }
 0xe7c   : > { %v2392_v45 = vsel %vm2391_vm3, %v2390_v43, -inf }
 0xe7d   : > { %2393 = vmax.xlane.f32.xlu0 %v2392_v45 }
 0xe93   : > { %2215 = vrot.lane.b32.xlu0 %v4924_v17, %s5361_s5  ;;  %s3742_s5 = sshll.u32 %s715_s25, 3 }
 0xe94   : > { %s717_s21 = scalar_lea.vmem [#allocation2], %s3742_s5 }
 0xe95   : > { %s3643_s22 = sshll.u32 %s717_s21, 4  ;;  %s3644_s22 = int_to_ptr.vmem [resolvable:$true] %s3643_s22 }
 0xe96   : > { %s4369_s29 = scalar_lea.vmem %s3644_s22, 128 }
 0xe97   : > { %p4370_p11 = scmp.ne.s32.totalorder %s3644_s22, %s4369_s29 }
 0xe99   : > { %p4371_p12 = pnand %p4370_p11, %p4595_p5 }
 0xe9b   : > { %p4372_p13 = pneg %p4371_p12 }
 0xeec   : > { %v2554_v48 = vpop.f32.mrf.mxu1 }
 0xeed   : > { %v2558_v49 = vmul.f32 0.35355338, %v2554_v48 }
 0xeee   : > { %v4172_v50 = vpop.f32.mrf.mxu1 }
 0xeef   : > { %v2559_v51 = vsel %vm2391_vm3, %v2558_v49, -inf }
 0xef0   : > { %2560 = vmax.xlane.f32.xlu1 %v2559_v51 }
 0xf06   : > { %v2394_v53 = vpop.xlane.xlu0 %2393 }
 0xf07   : > { %v2395_v54 = vsub.f32 %v2390_v43, %v2394_v53 }
 0xf09   : > { %v2396_v56 = vmul.f32 1.442695, %v2395_v54 }
 0xf0a   : > { %v2216_v57 = vpop.permute.xlu0 %2215 }
 0xf0b   : > { %4349 = vpow2.f32 %v2396_v56  ;;  %v5015_v58 = vadd.f32 %v4151_v52, %v2216_v57  ;;  %v5017_v59 = vadd.f32 %v2302_v55, %v2216_v57 }
 0xf0d   : > { %2572 = vrot.lane.b32.xlu0 %v5017_v59, %s5360_s1  ;;  %4160 = vmatpush3.msra.mxu0 %v5015_v58 }
 0xf0e   : > { %4161 = vmatprep.subr.mxu0 %v4431_v1 }
 0xf0f   : > { %4162 = vmatpush3.msra.mxu0 %v5017_v59 }
 0xf10   : > { %4173 = vmatprep.subr.mxu0 %v4431_v1 }
 0xf11   : > { %2661 = vrot.lane.b32.xlu0 %v4999_v46, %s5360_s1 }
 0xf15   : > { %2659 = vrot.lane.b32.xlu0 %v5007_v47, %s5360_s1 }
 0xf18   : > { %v4350_v61 = vpop.eup %4349 }
 0xf19   : > { %2655 = vrot.lane.b32.xlu0 %v5032_v60, %s5360_s1  ;;  %v2398_v62 = vsel %vm2391_vm3, %v4350_v61, 0.0 }
 0xf1a   : > { %2399 = vadd.xlane.f32.xlu1 %v2398_v62 }
 0xf1d   : > { %2827 = vrot.lane.b32.xlu0 %v4946_v33, %s5362_s7 }
 0xf21   : > { %3092 = vrot.lane.b32.xlu0 %v4940_v31, %s5363_s0 }
 0xf25   : > { %3088 = vrot.lane.b32.xlu0 %v4973_v38, %s5363_s0 }
 0xf79   : > { %v2561_v0 = vpop.xlane.xlu1 %2560 }
 0xf7a   : > { %v2562_v2 = vsub.f32 %v2558_v49, %v2561_v0 }
 0xf7c   : > { %v2563_v9 = vmul.f32 1.442695, %v2562_v2 }
 0xf7e   : > { %4351 = vpow2.f32 %v2563_v9 }
 0xf7f   : > { %v2573_v12 = vpop.permute.xlu0 %2572 }
 0xf83   : > { %v2662_v14 = vpop.permute.xlu0 %2661 }
 0xf87   : > { %v2660_v16 = vpop.permute.xlu0 %2659 }
 0xf8b   : > { %v4352_v3 = vpop.eup %4351  ;;  %v2656_v19 = vpop.permute.xlu0 %2655 }
 0xf8c   : > { %v2565_v4 = vsel %vm2391_vm3, %v4352_v3, 0.0 }
 0xf8d   : > { %2566 = vadd.xlane.f32.xlu1 %v2565_v4 }
 0xf8f   : > { %v2828_v18 = vpop.permute.xlu0 %2827 }
 0xf93   : > { %v3093_v28 = vpop.permute.xlu0 %3092 }
 0xf97   : > { %v3089_v30 = vpop.permute.xlu0 %3088 }
 0xf9e   : > { %2574 = vrot.lane.b32.xlu1 %v5015_v58, %s5360_s1 }
 0xfa2   : > { %2657 = vrot.lane.b32.xlu1 %v5042_v63, %s5360_s1  ;;  %s3875_s1 = sshll.u32 %s4578_s4, 7 }
 0xfa3   : > { %v2400_v5 = vpop.xlane.xlu1 %2399  ;;  %s3641_s8 = scalar_lea.hbm %s5366_s23, %s3875_s1 }
 0xfa4   : > { %4353 = vrcp.f32 %v2400_v5 }
 0xfa6   : > { %2829 = vrot.lane.b32.xlu1 %v4940_v31, %s5362_s7 }
 0xfaa   : > { %2825 = vrot.lane.b32.xlu1 %v4973_v38, %s5362_s7 }
 0xfae   : > { %3090 = vrot.lane.b32.xlu1 %v4946_v33, %s5363_s0 }
 0xfb1   : > { %v4354_v6 = vpop.eup %4353 }
 0xfb2   : > { %v2402_v7 = vmul.f32 %v4354_v6, %v4350_v61 }
 0xfb4   : > { %4164 = vmatmul.mubr.msk.f32.vlgmr.msra.gmra.mxu0 %vm2391_vm3, %v2402_v7 }
 0xfb5   : > { %4177 = vmatprep.mubr.msk.f32.mxu0 %vm4432_vm1, %v4431_v1 }
0x1016   : > { %v2567_v8 = vpop.xlane.xlu1 %2566 }
0x1017   : > { %4355 = vrcp.f32 %v2567_v8 }
0x101a   : > { %v2575_v11 = vpop.permute.xlu1 %2574 }
0x101b   : > { %4174 = vmatpush3.msra.mxu0 %v2575_v11 }
0x101c   : > { %4175 = vmatprep.subr.mxu0 %v4431_v1 }
0x101d   : > { %4176 = vmatpush3.msra.mxu0 %v2573_v12 }
0x101e   : > { %4180 = vmatprep.subr.mxu0 %v4431_v1  ;;  %v2658_v17 = vpop.permute.xlu1 %2657 }
0x1022   : > { %v2830_v23 = vpop.permute.xlu1 %2829 }
0x1024   : > { %v4356_v13 = vpop.eup %4355 }
0x1025   : > { %v2569_v15 = vmul.f32 %v4356_v13, %v4352_v3 }
0x1026   : > { %v2826_v26 = vpop.permute.xlu1 %2825 }
0x1027   : > { %4178 = vmatmul.mubr.msk.f32.vlgmr.msra.gmra.mxu0 %vm2391_vm3, %v2569_v15  ;;  %v3853_v15 = vld [vmem:[%s5299_s11] ss:$0 sm:$0xff] }
0x1028   : > { %4181 = vmatpush3.xpose.msk.msra.mxu0 %vm956_vm2, %v2662_v14  ;;  %4188 = vmatprep.mubr.msk.f32.mxu0 %vm4432_vm1, %v4431_v1 }
0x1029   : > { %4182 = vmatprep.subr.mxu0 %v4431_v1 }
0x102a   : > { %v3091_v29 = vpop.permute.xlu1 %3090 }
0x102c   : > { %4183 = vmatpush3.xpose.msk.msra.mxu0 %vm956_vm2, %v2660_v16 }
0x102d   : > { %4184 = vmatprep.subr.mxu0 %v4431_v1 }
0x1030   : > { %4185 = vmatpush3.xpose.msk.msra.mxu0 %vm956_vm2, %v2658_v17 }
0x1031   : > { %4186 = vmatprep.subr.mxu0 %v4431_v1 }
0x1034   : > { %4187 = vmatpush3.xpose.msk.msra.mxu0 %vm956_vm2, %v2656_v19 }
0x1035   : > { %4202 = vmatprep.subr.mxu0 %v4431_v1 }
0x1074   : > { %v2472_v20 = vpop.f32.mrf.mxu0 }
0x1075   : > { %4200 = vmatmul.mubr.msk.f32.vlgmr.msra.gmra.mxu1 %vm956_vm2, %v2472_v20 }
0x1076   : > { %v4165_v21 = vpop.f32.mrf.mxu0  ;;  %4213 = vmatprep.mubr.msk.f32.mxu1 %vm4432_vm1, %v4431_v1 }
0x10e7   : > { %v2647_v22 = vpop.f32.mrf.mxu0 }
0x10e8   : > { %4189 = vmatmul.mubr.msk.f32.vlgmr.msra.gmra.mxu0 %vm956_vm2, %v2647_v22 }
0x10e9   : > { %4203 = vmatpush3.xpose.msk.msra.mxu0 %vm956_vm2, %v2830_v23  ;;  %v4179_v25 = vpop.f32.mrf.mxu0  ;;  %4206 = vmatprep.mubr.msk.f32.mxu0 %vm4432_vm1, %v4431_v1  ;;  %v3395_v23 = vld [vmem:[%s5300_s12 + $0x38] sm:$0xff] }
0x10ea   : > { %4204 = vmatprep.subr.mxu0 %v4431_v1  ;;  %v3394_v25 = vld [vmem:[%s5300_s12 + $0x30] sm:$0xff] }
0x10ed   : > { %4205 = vmatpush3.xpose.msk.msra.mxu0 %vm956_vm2, %v2828_v18 }
0x10ee   : > { %4227 = vmatprep.subr.mxu0 %v4431_v1 }
0x10f0   : > { %4207 = vmatmul.mubr.msk.f32.vlgmr.msra.gmra.mxu0 %vm956_vm2, %v2826_v26 }
0x10f1   : > { %4228 = vmatpush3.xpose.msk.msra.mxu0 %vm956_vm2, %v3093_v28  ;;  %4231 = vmatprep.mubr.msk.f32.mxu0 %vm4432_vm1, %v4431_v1 }
0x10f2   : > { %4229 = vmatprep.subr.mxu0 %v4431_v1 }
0x10f5   : > { %4230 = vmatpush3.xpose.msk.msra.mxu0 %vm956_vm2, %v3091_v29 }
0x10f6   : > { %4234 = vmatprep.subr.mxu0 %v4431_v1 }
0x10f8   : > { %4232 = vmatmul.mubr.msk.f32.vlgmr.msra.gmra.mxu0 %vm956_vm2, %v3089_v30  ;;  %v3393_v30 = vld [vmem:[%s5300_s12 + $0x28] sm:$0xff] }
0x10f9   : > { %4238 = vmatprep.mubr.msk.f32.mxu0 %vm4432_vm1, %v4431_v1 }
0x1135   : > { %v5101_v31 = vpop.f32.mrf.mxu1 }
0x1137   : > { %v4201_v32 = vpop.f32.mrf.mxu1 }
0x1138   : > { %v3391_v32 = vld [vmem:[%s5300_s12 + $0x18] sm:$0xff] }
0x11a8   : > { %v5103_v33 = vpop.f32.mrf.mxu0 }
0x11a9   : > { %v2822_v13 = vadd.f32 %v5101_v31, %v5103_v33  ;;  %v3392_v31 = vld [vmem:[%s5300_s12 + $0x20] sm:$0xff]  ;;  %v3390_v33 = vld [vmem:[%s5300_s12 + $0x10] sm:$0xff] }
0x11aa   : > { %v4190_v10 = vpop.f32.mrf.mxu0 }
0x11ab   : > { %v3389_v10 = vld [vmem:[%s5300_s12 + $0x8] sm:$0xff] }
0x11b0   : > { %v2903_v34 = vpop.f32.mrf.mxu0 }
0x11b1   : > { %v2907_v35 = vmul.f32 0.35355338, %v2903_v34  ;;  %v3388_v34 = vld [vmem:[%s5300_s12] sm:$0xff] }
0x11b2   : > { %v4208_v36 = vpop.f32.mrf.mxu0 }
0x11b3   : > { %v2908_v37 = vsel %vm2391_vm3, %v2907_v35, -inf  ;;  %v3503_v36 = vld [vmem:[%s5302_s14 + $0x10] sm:$0xff] }
0x11b4   : > { %2909 = vmax.xlane.f32.xlu1 %v2908_v37  ;;  %v3502_v37 = vld [vmem:[%s5302_s14 + $0x8] sm:$0xff] }
0x11b8   : > { %v3166_v38 = vpop.f32.mrf.mxu0 }
0x11b9   : > { %v3170_v39 = vmul.f32 0.35355338, %v3166_v38 }
0x11ba   : > { %v4233_v40 = vpop.f32.mrf.mxu0 }
0x11bb   : > { %v3171_v24 = vsel %vm2391_vm3, %v3170_v39, -inf }
0x11bc   : > { %3172 = vmax.xlane.f32.xlu0 %v3171_v24 }
0x11c5   : > { %2919 = vrot.lane.b32.xlu1 %v5017_v59, %s5362_s7 }
0x11d2   : > { %2921 = vrot.lane.b32.xlu0 %v5015_v58, %s5362_s7 }
0x123d   : > { %v2910_v41 = vpop.xlane.xlu1 %2909 }
0x123e   : > { %v2911_v42 = vsub.f32 %v2907_v35, %v2910_v41  ;;  %v3504_v35 = vld [vmem:[%s5302_s14 + $0x18] sm:$0xff]  ;;  %v3854_v41 = vld [vmem:[%s5306_s18] ss:$0 sm:$0xff] }
0x1240   : > { %v2912_v43 = vmul.f32 1.442695, %v2911_v42 }
0x1241   : > { %v2920_v50 = vpop.permute.xlu1 %2919 }
0x1242   : > { %4357 = vpow2.f32 %v2912_v43  ;;  %v3855_v43 = vld [vmem:[%s5307_s19] ss:$0 sm:$0xff] }
0x1245   : > { %v3173_v44 = vpop.xlane.xlu0 %3172 }
0x1246   : > { %v3174_v45 = vsub.f32 %v3170_v39, %v3173_v44 }
0x1248   : > { %v3175_v48 = vmul.f32 1.442695, %v3174_v45 }
0x1249   : > { %v2922_v49 = vpop.permute.xlu0 %2921 }
0x124a   : > { %4359 = vpow2.f32 %v3175_v48  ;;  %4210 = vmatpush3.msra.mxu1 %v2922_v49  ;;  %v3856_v48 = vld [vmem:[%s5301_s13] ss:$0 sm:$0xff] }
0x124b   : > { %4211 = vmatprep.subr.mxu1 %v4431_v1 }
0x124c   : > { %4212 = vmatpush3.msra.mxu1 %v2920_v50 }
0x124d   : > { %4216 = vmatprep.subr.mxu1 %v4431_v1 }
0x124f   : > { %v4358_v51 = vpop.eup %4357 }
0x1250   : > { %v2914_v52 = vsel %vm2391_vm3, %v4358_v51, 0.0 }
0x1251   : > { %2915 = vadd.xlane.f32.xlu0 %v2914_v52 }
0x1257   : > { %v4360_v53 = vpop.eup %4359 }
0x1258   : > { %v3177_v54 = vsel %vm2391_vm3, %v4360_v53, 0.0 }
0x1259   : > { %3178 = vadd.xlane.f32.xlu1 %v3177_v54 }
0x1267   : > { %3182 = vrot.lane.b32.xlu0 %v5017_v59, %s5363_s0 }
0x126a   : > { %3184 = vrot.lane.b32.xlu1 %v5015_v58, %s5363_s0 }
0x126b   : > { %3267 = vrot.lane.b32.xlu0 %v4999_v46, %s5363_s0 }
0x126e   : > { %3004 = vrot.lane.b32.xlu1 %v4999_v46, %s5362_s7 }
0x126f   : > { %3265 = vrot.lane.b32.xlu0 %v5007_v47, %s5363_s0 }
0x1272   : > { %3002 = vrot.lane.b32.xlu1 %v5007_v47, %s5362_s7 }
0x1273   : > { %3263 = vrot.lane.b32.xlu0 %v5042_v63, %s5363_s0 }
0x1276   : > { %3000 = vrot.lane.b32.xlu1 %v5042_v63, %s5362_s7 }
0x1277   : > { %3261 = vrot.lane.b32.xlu0 %v5032_v60, %s5363_s0  ;;  %s5365_s0 = sld [smem:[#allocation22_spill]] }
0x127a   : > { %2998 = vrot.lane.b32.xlu1 %v5032_v60, %s5362_s7  ;;  %s5364_s7 = sld [smem:[#allocation21_spill]] }
0x12da   : > { %v2916_v55 = vpop.xlane.xlu0 %2915 }
0x12db   : > { %4361 = vrcp.f32 %v2916_v55 }
0x12de   : > { %v3183_v47 = vpop.permute.xlu0 %3182 }
0x12e2   : > { %v3179_v46 = vpop.xlane.xlu1 %3178  ;;  %v3268_v61 = vpop.permute.xlu0 %3267 }
0x12e3   : > { %4363 = vrcp.f32 %v3179_v46 }
0x12e6   : > { %v3185_v56 = vpop.permute.xlu1 %3184  ;;  %v3266_v2 = vpop.permute.xlu0 %3265 }
0x12e7   : > { %4235 = vmatpush3.msra.mxu0 %v3185_v56 }
0x12e8   : > { %v4362_v57 = vpop.eup %4361  ;;  %4236 = vmatprep.subr.mxu0 %v4431_v1 }
0x12e9   : > { %4237 = vmatpush3.msra.mxu0 %v3183_v47  ;;  %v2918_v58 = vmul.f32 %v4362_v57, %v4358_v51 }
0x12ea   : > { %v3005_v59 = vpop.permute.xlu1 %3004  ;;  %4241 = vmatprep.subr.mxu0 %v4431_v1  ;;  %v3264_v3 = vpop.permute.xlu0 %3263 }
0x12eb   : > { %4214 = vmatmul.mubr.msk.f32.vlgmr.msra.gmra.mxu1 %vm2391_vm3, %v2918_v58 }
0x12ec   : > { %4217 = vmatpush3.xpose.msk.msra.mxu1 %vm956_vm2, %v3005_v59  ;;  %4224 = vmatprep.mubr.msk.f32.mxu1 %vm4432_vm1, %v4431_v1 }
0x12ed   : > { %4218 = vmatprep.subr.mxu1 %v4431_v1 }
0x12ee   : > { %v3003_v60 = vpop.permute.xlu1 %3002  ;;  %v3262_v4 = vpop.permute.xlu0 %3261 }
0x12f0   : > { %v4364_v62 = vpop.eup %4363  ;;  %4219 = vmatpush3.xpose.msk.msra.mxu1 %vm956_vm2, %v3003_v60 }
0x12f1   : > { %v3181_v63 = vmul.f32 %v4364_v62, %v4360_v53  ;;  %4220 = vmatprep.subr.mxu1 %v4431_v1  ;;  %v3866_v53 = vld [vmem:[%s5303_s15] ss:$0 sm:$0xff] }
0x12f2   : > { %v3001_v0 = vpop.permute.xlu1 %3000 }
0x12f3   : > { %4239 = vmatmul.mubr.msk.f32.vlgmr.msra.gmra.mxu0 %vm2391_vm3, %v3181_v63 }
0x12f4   : > { %4221 = vmatpush3.xpose.msk.msra.mxu1 %vm956_vm2, %v3001_v0  ;;  %4242 = vmatpush3.xpose.msk.msra.mxu0 %vm956_vm2, %v3268_v61 }
0x12f5   : > { %4222 = vmatprep.subr.mxu1 %v4431_v1  ;;  %4243 = vmatprep.subr.mxu0 %v4431_v1 }
0x12f6   : > { %v2999_v9 = vpop.permute.xlu1 %2998  ;;  %4249 = vmatprep.mubr.msk.f32.mxu0 %vm4432_vm1, %v4431_v1 }
0x12f8   : > { %4223 = vmatpush3.xpose.msk.msra.mxu1 %vm956_vm2, %v2999_v9  ;;  %4244 = vmatpush3.xpose.msk.msra.mxu0 %vm956_vm2, %v3266_v2  ;;  %v3872_v9 = vld [vmem:[%s5364_s7] ss:$0 sm:$0xff]  ;;  %s4373_s7 = sshll.u32 %s4441_s24, 4  ;;  %s4374_s7 = int_to_ptr.vmem [resolvable:$false] %s4373_s7 }
0x12f9   : > { %4245 = vmatprep.subr.mxu0 %v4431_v1  ;;  %4252 = vmatprep.subr.mxu1 %v4431_v1  ;;  %s4375_s4 = scalar_lea.vmem %s4374_s7, 256  ;;  %p4376_p0 = scmp.lt.s32.totalorder %s3644_s22, %s4374_s7 }
0x12fa   : > { %p4377_p1 = scmp.lt.s32.totalorder %s4375_s4, %s4369_s29 }
0x12fc   : > { %4246 = vmatpush3.xpose.msk.msra.mxu0 %vm956_vm2, %v3264_v3  ;;  %p4378_p2 = por %p4377_p1, %p4376_p0 }
0x12fd   : > { %4247 = vmatprep.subr.mxu0 %v4431_v1 }
0x12fe   : > { %p4379_p3 = pnand %p4378_p2, %p4372_p13 }
0x1300   : > { %4248 = vmatpush3.xpose.msk.msra.mxu0 %vm956_vm2, %v3262_v4  ;;  %v3873_v4 = vld [vmem:[%s5365_s0] ss:$0 sm:$0xff] }
0x1301   : > { %4271 = vmatprep.subr.mxu0 %v4431_v1 }
0x13ab   : > { %v2994_v5 = vpop.f32.mrf.mxu1 }
0x13ac   : > { %4225 = vmatmul.mubr.msk.f32.vlgmr.msra.gmra.mxu1 %vm956_vm2, %v2994_v5 }
0x13ad   : > { %v4215_v6 = vpop.f32.mrf.mxu1  ;;  %4268 = vmatprep.mubr.msk.f32.mxu1 %vm4432_vm1, %v4431_v1  ;;  %4253 = vmatpush3.xpose.msk.msra.mxu1 %vm767_vm0, %v3395_v23 }
0x13ae   : > { %4254 = vmatprep.subr.mxu1 %v4431_v1 }
0x13b1   : > { %4255 = vmatpush3.xpose.msk.msra.mxu1 %vm767_vm0, %v3394_v25 }
0x13b2   : > { %4256 = vmatprep.subr.mxu1 %v4431_v1 }
0x13b3   : > { %v3257_v7 = vpop.f32.mrf.mxu0 }
0x13b4   : > { %4250 = vmatmul.mubr.msk.f32.vlgmr.msra.gmra.mxu0 %vm956_vm2, %v3257_v7 }
0x13b5   : > { %v4240_v8 = vpop.f32.mrf.mxu0  ;;  %4279 = vmatprep.mubr.msk.f32.mxu0 %vm4432_vm1, %v4431_v1  ;;  %4257 = vmatpush3.xpose.msk.msra.mxu1 %vm767_vm0, %v3393_v30 }
0x13b6   : > { %4258 = vmatprep.subr.mxu1 %v4431_v1  ;;  %4272 = vmatpush3.xpose.msk.msra.mxu0 %vm3512_vm4, %v3504_v35 }
0x13b7   : > { %4273 = vmatprep.subr.mxu0 %v4431_v1 }
0x13b9   : > { %4259 = vmatpush3.xpose.msk.msra.mxu1 %vm767_vm0, %v3392_v31 }
0x13ba   : > { %4260 = vmatprep.subr.mxu1 %v4431_v1  ;;  %4274 = vmatpush3.xpose.msk.msra.mxu0 %vm3512_vm4, %v3503_v36 }
0x13bb   : > { %4275 = vmatprep.subr.mxu0 %v4431_v1 }
0x13bd   : > { %4261 = vmatpush3.xpose.msk.msra.mxu1 %vm767_vm0, %v3391_v32 }
0x13be   : > { %4262 = vmatprep.subr.mxu1 %v4431_v1  ;;  %4276 = vmatpush3.xpose.msk.msra.mxu0 %vm3512_vm4, %v3502_v37 }
0x13bf   : > { %4277 = vmatprep.subr.mxu0 %v4431_v1 }
0x13c1   : > { %4263 = vmatpush3.xpose.msk.msra.mxu1 %vm767_vm0, %v3390_v33 }
0x13c2   : > { %4264 = vmatprep.subr.mxu1 %v4431_v1 }
0x13c5   : > { %4265 = vmatpush3.xpose.msk.msra.mxu1 %vm767_vm0, %v3389_v10 }
0x13c6   : > { %4266 = vmatprep.subr.mxu1 %v4431_v1  ;;  %v3501_v1 = vld [vmem:[%s5302_s14] sm:$0xff] }
0x13c7   : > { %4278 = vmatpush3.xpose.msk.msra.mxu0 %vm3512_vm4, %v3501_v1 }
0x13c9   : > { %4267 = vmatpush3.xpose.msk.msra.mxu1 %vm767_vm0, %v3388_v34 }
0x146c   : > { %v3083_v11 = vpop.f32.mrf.mxu1 }
0x146d   : > { %v3087_v14 = vadd.f32 %v3083_v11, %v2822_v13 }
0x146e   : > { %v4226_v12 = vpop.f32.mrf.mxu1 }
0x1474   : > { %v3346_v16 = vpop.f32.mrf.mxu0 }
0x1475   : > { %v3350_v17 = vadd.f32 %v3346_v16, %v3087_v14 }
0x1476   : > { %v4251_v19 = vpop.f32.mrf.mxu0 }
0x1477   : > { %v3357_v20 = vadd.f32 %v3853_v15, %v3350_v17 }
0x1479   : > { %v3358_v21 = vadd.f32 %v3357_v20, %v4934_v27 }
0x147b   : > { %v3361_v22 = vsel %vm767_vm0, %v3358_v21, 0.0 }
0x147c   : > { %3362 = vadd.xlane.f32.xlu1 %v3361_v22 }
0x1505   : > { %v3363_v27 = vpop.xlane.xlu1 %3362 }
0x1506   : > { %v3364_v18 = vmul.f32 0.03125, %v3363_v27 }
0x1508   : > { %v3365_v26 = vsub.f32 %v3358_v21, %v3364_v18 }
0x150a   : > { %v3366_v28 = vmul.f32 %v3365_v26, %v3365_v26 }
0x150c   : > { %v3367_v29 = vsel %vm767_vm0, %v3366_v28, 0.0 }
0x150d   : > { %3368 = vadd.xlane.f32.xlu0 %v3367_v29 }
0x1596   : > { %v3369_v38 = vpop.xlane.xlu0 %3368 }
0x1597   : > { %v3370_v39 = vmul.f32 0.03125, %v3369_v38 }
0x1599   : > { %v3371_v40 = vadd.f32 1e-05, %v3370_v39 }
0x159b   : > { %4365 = vrsqrt.f32 %v3371_v40 }
0x15a8   : > { %v4366_v24 = vpop.eup %4365 }
0x15a9   : > { %v3373_v42 = vmul.f32 %v4366_v24, %v3365_v26 }
0x15ab   : > { %v3380_v44 = vmul.f32 %v3854_v41, %v3373_v42 }
0x15ad   : > { %v3387_v45 = vadd.f32 %v3855_v43, %v3380_v44 }
0x15af   : > { %4269 = vmatmul.mubr.msk.f32.vlgmr.msra.gmra.mxu1 %vm767_vm0, %v3387_v45 }
0x166f   : > { %v3496_v49 = vpop.f32.mrf.mxu1 }
0x1670   : > { %v3497_v50 = vadd.f32 %v3856_v48, %v3496_v49 }
0x1671   : > { %v4270_v51 = vpop.f32.mrf.mxu1 }
0x1672   : > { %v3500_v52 = vmax.f32 %v3497_v50, 0.0 }
0x1674   : > { %4280 = vmatmul.mubr.msk.f32.vlgmr.msra.gmra.mxu0 %vm3512_vm4, %v3500_v52 }
0x1734   : > { %v3594_v54 = vpop.f32.mrf.mxu0 }
0x1735   : > { %v3595_v55 = vadd.f32 %v3866_v53, %v3594_v54 }
0x1736   : > { %v4281_v46 = vpop.f32.mrf.mxu0 }
0x1737   : > { %v3598_v56 = vadd.f32 %v3595_v55, %v3387_v45 }
0x1739   : > { %v3601_v57 = vsel %vm767_vm0, %v3598_v56, 0.0 }
0x173a   : > { %3602 = vadd.xlane.f32.xlu0 %v3601_v57 }
0x17c3   : > { %v3603_v47 = vpop.xlane.xlu0 %3602 }
0x17c4   : > { %v3604_v58 = vmul.f32 0.03125, %v3603_v47 }
0x17c6   : > { %v3605_v59 = vsub.f32 %v3598_v56, %v3604_v58 }
0x17c8   : > { %v3606_v60 = vmul.f32 %v3605_v59, %v3605_v59 }
0x17ca   : > { %v3607_v61 = vsel %vm767_vm0, %v3606_v60, 0.0 }
0x17cb   : > { %3608 = vadd.xlane.f32.xlu1 %v3607_v61 }
0x1854   : > { %v3609_v62 = vpop.xlane.xlu1 %3608 }
0x1855   : > { %v3610_v63 = vmul.f32 0.03125, %v3609_v62 }
0x1857   : > { %v3611_v0 = vadd.f32 1e-05, %v3610_v63 }
0x1859   : > { %4367 = vrsqrt.f32 %v3611_v0 }
0x1866   : > { %v4368_v2 = vpop.eup %4367 }
0x1867   : > { %v3613_v3 = vmul.f32 %v4368_v2, %v3605_v59 }
0x1869   : > { %v3620_v5 = vmul.f32 %v3872_v9, %v3613_v3 }
0x186b   : > { %v3627_v6 = vadd.f32 %v3873_v4, %v3620_v5 }
0x186d   : > { %3628 = vst.msk [vmem:[%s717_s21] sm:$0xff] %vm767_vm0, %v3627_v6 }
0x186e   : > { %4382 = shalt.err (!%p4379_p3)
}
0x186f   : > { %s4383_s5 = scalar_lea.hbm %s3641_s8, 128  ;;  %s4387_s26 = scalar_lea.hbm %s5366_s23, 256 }
0x1870   : > { %p4384_p4 = scmp.ne.s32.totalorder %s3641_s8, %s4383_s5  ;;  %p4388_p9 = scmp.lt.s32.totalorder %s3641_s8, %s5366_s23 }
0x1871   : > { %p4389_p10 = scmp.lt.s32.totalorder %s4387_s26, %s4383_s5 }
0x1872   : > { %p4385_p7 = pnand %p4384_p4, %p4595_p5 }
0x1873   : > { %p4390_p11 = por %p4389_p10, %p4388_p9 }
0x1874   : > { %p4386_p8 = pneg %p4385_p7 }
0x1876   : > { %p4391_p12 = pnand %p4390_p11, %p4386_p8 }
0x1878   : > { %4394 = shalt.err (!%p4391_p12)
}
0x1879   : > { %4282 = dma.vmem_to_hbm [thread:$0]  (%p4595_p5), %s3644_s22, 128, %s3641_s8, %s3630_s9  }
0x187a PF: > { %s5367_s21 = sld [smem:[#allocation7_spill]] }
0x187b   : > { %s5368_s3 = sld [smem:[#allocation5_spill]] }
0x1880   : > { %p4288_p13 = scmp.ge.s32.totalorder %s5367_s21, 2 }
0x1881   : > { %s3655_s29 = sand.u32 1, %s5368_s3  }
0x1882   : > { %p4285_p0 = pnand %p4288_p13, %p4599_p6  ;;  %s3656_s24 = scalar_lea.sflag [#allocation3], %s3655_s29 }
0x1884   : > { %p4286_p1 = pneg %p4285_p0 }
0x1886   : > { %4412 = dma.done.wait (%p4286_p1), %s3656_s24, 128  }
0x1887   : > { %4414 = vsyncadd (%p4286_p1), %s3656_s24, 4294967168  ;;  %s5370_s30 = sld [smem:[#allocation8_spill]]  ;;  %s5373_s3 = smov %s4421_s28 }
0x1888   : > { %s5371_s7 = sld [smem:[#allocation6_spill]] }
0x1889   : > { %s5372_s29 = sld [smem:[#allocation9_spill]] }
0x188d   : > { %p32_p2 = scmp.ge.s32.totalorder %s5370_s30, 4  }
0x188e   : > { %s5374_s28 = smov %s5371_s7 }
0x188f   :  { %34 = sbr.rel (!%p32_p2) target bundleno = 17 (0x11), region = 152 }
0x1894   :  { %3661 = vsyncpa [#allocation3], 1 }
0x1895   :  { %3663 = vsyncpa [#allocation3 + $0x1], 1 }

</bundles_post_ra>
